<compile_context>
chip_gen: v7x
topology: tpu7x:2x2x1
jax: 0.10.0
libtpu: 0.0.40
codegen_flags: <defaults>
</compile_context>

<pallas_src>
import jax
import jax.numpy as jnp
from jax.experimental import pallas as pl
from jax.experimental.pallas import tpu as pltpu


_NEG_INF = -1e30
# Scoped-VMEM limit for the tiled path.  Retune per generation: ~48 MiB is safe
# on v7x (64 MiB physical); v5e/v6e (128 MiB) can go higher with tm=512.
_VMEM_LIMIT_BYTES = 48 * 1024 * 1024


def _round_up(a, b):
    return (a + b - 1) // b * b


def _expand_att(att, heads, c):
    """att [H, C] -> block-diagonal [H*C, H] with A[h*C + k, h] = att[h, k]."""
    eye = jnp.eye(heads, dtype=jnp.float32)
    return (att.astype(jnp.float32)[:, :, None] * eye[:, None, :]).reshape(
        heads * c, heads)


# --------------------------------------------------------------------------- #
# Shared per-layer math on plain jnp values (used by the fused whole-graph
# kernel).  bf16 MXU inputs, f32 accumulation, deferred softmax normalization.
# --------------------------------------------------------------------------- #
def _gat_layer(x_bf, w_bf, asrc_mat, adst_mat, mask, bias, scale, shift,
               heads, c, concat):
    xp = jnp.dot(x_bf, w_bf, preferred_element_type=jnp.float32)      # [N,H*C]
    xp_bf = xp.astype(jnp.bfloat16)
    a_dst = jnp.dot(xp, adst_mat, preferred_element_type=jnp.float32)  # [N,H]
    a_src = jax.lax.dot_general(asrc_mat, xp, (((0,), (1,)), ((), ())),
                                preferred_element_type=jnp.float32)    # [H,N]
    outs = []
    for h in range(heads):                                 # static unroll
        e = a_dst[:, h:h + 1] + a_src[h:h + 1, :]          # [N,N] f32
        e = jnp.where(e > 0, e, 0.2 * e)                   # LeakyReLU(0.2)
        e = jnp.where(mask, e, _NEG_INF)
        m = jnp.max(e, axis=-1, keepdims=True)
        p = jnp.exp(e - m)
        denom = jnp.sum(p, axis=-1, keepdims=True)
        o = jnp.dot(p.astype(jnp.bfloat16), xp_bf[:, h * c:(h + 1) * c],
                    preferred_element_type=jnp.float32)    # [N,C]
        outs.append(o * pl.reciprocal(denom, approx=True))  # deferred norm
    if concat:
        y = jnp.concatenate(outs, axis=-1) + bias          # [N,H*C]
        y = jnp.where(y > 0, y, jnp.exp(y) - 1.0)          # ELU(alpha=1)
        y = y * scale + shift                              # eval-mode BN affine
        return y.astype(jnp.bfloat16)
    acc = outs[0]
    for o in outs[1:]:
        acc = acc + o
    return acc * (1.0 / heads) + bias                      # mean over heads


# --------------------------------------------------------------------------- #
# Fused whole-graph kernel: all 3 GATConv layers in a single grid step.
# --------------------------------------------------------------------------- #
def _make_fused_kernel(heads, c1, c2, c3):
    def kernel(x_ref, adj_ref,
               w1_ref, s1_ref, d1_ref, b1_ref, g1_ref, t1_ref,
               w2_ref, s2_ref, d2_ref, b2_ref, g2_ref, t2_ref,
               w3_ref, s3_ref, d3_ref, b3_ref,
               out_ref):
        # int8 -> f32 once; 32-bit mask reused by all three layers.
        mask = adj_ref[...].astype(jnp.float32) > 0
        h = _gat_layer(x_ref[...], w1_ref[...], s1_ref[...], d1_ref[...], mask,
                       b1_ref[...], g1_ref[...], t1_ref[...], heads, c1, True)
        h = _gat_layer(h, w2_ref[...], s2_ref[...], d2_ref[...], mask,
                       b2_ref[...], g2_ref[...], t2_ref[...], heads, c2, True)
        y = _gat_layer(h, w3_ref[...], s3_ref[...], d3_ref[...], mask,
                       b3_ref[...], None, None, heads, c3, False)
        out_ref[...] = y.astype(out_ref.dtype)
    return kernel


def _fused_forward(x_bf, adj_i8, layers, heads, n_pad):
    (w1, s1, d1, b1, g1, t1, c1, _), \
        (w2, s2, d2, b2, g2, t2, c2, _), \
        (w3, s3, d3, b3, _, _, c3, _) = layers
    args = [x_bf, adj_i8,
            w1, s1, d1, b1, g1, t1,
            w2, s2, d2, b2, g2, t2,
            w3, s3, d3, b3]
    in_specs = [pl.BlockSpec(a.shape, lambda i, nd=a.ndim: (0,) * nd)
                for a in args]
    return pl.pallas_call(
        _make_fused_kernel(heads, c1, c2, c3),
        grid=(1,),
        in_specs=in_specs,
        out_specs=pl.BlockSpec((n_pad, c3), lambda i: (0, 0)),
        out_shape=jax.ShapeDtypeStruct((n_pad, c3), jnp.float32),
        compiler_params=pltpu.CompilerParams(
            dimension_semantics=("arbitrary",),
            vmem_limit_bytes=_VMEM_LIMIT_BYTES),
    )(*args)


# --------------------------------------------------------------------------- #
# General tiled path (large graphs): per layer, one projection pallas_call and
# one row-parallel attention pallas_call.
# --------------------------------------------------------------------------- #
def _resident_spec(shape, multi_step):
    # Constant-index resident inputs: single-buffer them when the grid has more
    # than one step (saves VMEM, matters most on v7x's 64 MiB budget).
    if multi_step:
        return pl.BlockSpec(shape, lambda i: (0,) * len(shape),
                            pipeline_mode=pl.Buffered(1))
    return pl.BlockSpec(shape, lambda i: (0,) * len(shape))


def _proj_kernel(x_ref, w_ref, asrc_mat_ref, adst_mat_ref,
                 xp_ref, adst_ref, asrc_ref):
    xp = jnp.dot(x_ref[...], w_ref[...], preferred_element_type=jnp.float32)
    xp_ref[...] = xp.astype(jnp.bfloat16)                       # [tm, H*C]
    adst_ref[...] = jnp.dot(xp, adst_mat_ref[...],
                            preferred_element_type=jnp.float32)  # [tm, H]
    # alpha_src stored transposed [H, tm] so per-head rows are contiguous.
    asrc_ref[...] = jax.lax.dot_general(
        asrc_mat_ref[...], xp, (((0,), (1,)), ((), ())),
        preferred_element_type=jnp.float32)                      # [H, tm]


def gat_project(x_bf, w_bf, asrc_mat, adst_mat, *, heads, tm):
    n_pad, f_in = x_bf.shape
    hc = w_bf.shape[1]
    steps = n_pad // tm
    multi = steps > 1
    return pl.pallas_call(
        _proj_kernel,
        grid=(steps,),
        in_specs=[
            pl.BlockSpec((tm, f_in), lambda i: (i, 0)),
            _resident_spec((f_in, hc), multi),
            _resident_spec((hc, heads), multi),
            _resident_spec((hc, heads), multi),
        ],
        out_specs=[
            pl.BlockSpec((tm, hc), lambda i: (i, 0)),
            pl.BlockSpec((tm, heads), lambda i: (i, 0)),
            pl.BlockSpec((heads, tm), lambda i: (0, i)),
        ],
        out_shape=[
            jax.ShapeDtypeStruct((n_pad, hc), jnp.bfloat16),
            jax.ShapeDtypeStruct((n_pad, heads), jnp.float32),
            jax.ShapeDtypeStruct((heads, n_pad), jnp.float32),
        ],
        compiler_params=pltpu.CompilerParams(
            dimension_semantics=("parallel",),
            vmem_limit_bytes=_VMEM_LIMIT_BYTES),
    )(x_bf, w_bf, asrc_mat, adst_mat)


def _make_attn_kernel(heads, c, concat):
    def kernel(xp_ref, adst_ref, asrc_ref, adj_ref,
               bias_ref, scale_ref, shift_ref, out_ref, y_ref):
        mask = adj_ref[...].astype(jnp.float32) > 0    # [tm, N] 32-bit mask
        a_dst = adst_ref[...]                          # [tm, H]
        a_src = asrc_ref[...]                          # [H, N]
        xp_bf = xp_ref[...]                            # [N, H*C] bf16
        for h in range(heads):                         # static unroll (H small)
            e = a_dst[:, h:h + 1] + a_src[h:h + 1, :]  # [tm, N] f32
            e = jnp.where(e > 0, e, 0.2 * e)           # LeakyReLU(0.2)
            e = jnp.where(mask, e, _NEG_INF)
            m = jnp.max(e, axis=-1, keepdims=True)
            p = jnp.exp(e - m)
            denom = jnp.sum(p, axis=-1, keepdims=True)
            o = jnp.dot(p.astype(jnp.bfloat16), xp_bf[:, h * c:(h + 1) * c],
                        preferred_element_type=jnp.float32)   # [tm, C]
            o = o * pl.reciprocal(denom, approx=True)  # deferred softmax norm
            if concat:
                y_ref[:, h * c:(h + 1) * c] = o        # static column offsets
            elif h == 0:
                y_ref[...] = o
            else:
                y_ref[...] = y_ref[...] + o
        if concat:
            y = y_ref[...] + bias_ref[...]
            y = jnp.where(y > 0, y, jnp.exp(y) - 1.0)  # ELU(alpha=1)
            y = y * scale_ref[...] + shift_ref[...]    # eval-mode BN affine
        else:
            y = y_ref[...] * (1.0 / heads) + bias_ref[...]
        out_ref[...] = y.astype(out_ref.dtype)
    return kernel


def gat_attend(xp_bf, adst, asrc, adj_i8, bias, scale, shift, *,
               heads, c, concat, tm, out_dtype):
    n_pad, hc = xp_bf.shape
    out_dim = hc if concat else c
    steps = n_pad // tm
    multi = steps > 1
    return pl.pallas_call(
        _make_attn_kernel(heads, c, concat),
        grid=(steps,),
        in_specs=[
            _resident_spec((n_pad, hc), multi),           # xp (all src rows)
            pl.BlockSpec((tm, heads), lambda i: (i, 0)),  # alpha_dst tile
            _resident_spec((heads, n_pad), multi),        # alpha_src (all src)
            pl.BlockSpec((tm, n_pad), lambda i: (i, 0)),  # int8 adjacency tile
            _resident_spec((1, out_dim), multi),
            _resident_spec((1, out_dim), multi),
            _resident_spec((1, out_dim), multi),
        ],
        out_specs=pl.BlockSpec((tm, out_dim), lambda i: (i, 0)),
        out_shape=jax.ShapeDtypeStruct((n_pad, out_dim), out_dtype),
        scratch_shapes=[pltpu.VMEM((tm, out_dim), jnp.float32)],
        compiler_params=pltpu.CompilerParams(
            dimension_semantics=("parallel",),   # no grid-carried state
            vmem_limit_bytes=_VMEM_LIMIT_BYTES),
    )(xp_bf, adst, asrc, adj_i8, bias, scale, shift)


def _layered_forward(x_bf, adj_i8, layers, heads, tm):
    h = x_bf
    for (w_bf, asrc_mat, adst_mat, bias, scale, shift, c, concat) in layers:
        xp, adst, asrc = gat_project(h, w_bf, asrc_mat, adst_mat,
                                     heads=heads, tm=tm)
        out_dtype = jnp.bfloat16 if concat else jnp.float32  # bf16 inter-layer
        h = gat_attend(xp, adst, asrc, adj_i8, bias, scale, shift,
                       heads=heads, c=c, concat=concat, tm=tm,
                       out_dtype=out_dtype)
    return h


# --------------------------------------------------------------------------- #
# Full forward pass.
# --------------------------------------------------------------------------- #
def gat_forward(x, edge_index, params, *, heads=4, tm_max=256,
                force_layered=False):
    n = x.shape[0]
    # Row-tile / padding selection: single tile if the graph fits, else tm_max
    # (forced to a multiple of 32 for the int8 adjacency tile).
    if n <= tm_max:
        n_pad = _round_up(n, 8)
        tm = n_pad
    else:
        tm = _round_up(tm_max, 32)
        n_pad = _round_up(n, tm)

    # Dense int8 adjacency with self loops: adj[i, j] = 1 if edge j -> i.
    # (Duplicate edges are de-duplicated; simple-graph assumption.)
    src, dst = edge_index[0], edge_index[1]
    adj = jnp.zeros((n_pad, n_pad), jnp.int8).at[dst, src].set(1)
    idx = jnp.arange(n)
    adj = adj.at[idx, idx].set(1)

    x_bf = jnp.zeros((n_pad, x.shape[1]), jnp.bfloat16).at[:n].set(
        x.astype(jnp.bfloat16))

    eps = 1e-5
    scale1 = params["bn1_g"] / jnp.sqrt(params["bn1_rv"] + eps)
    shift1 = params["bn1_b"] - params["bn1_rm"] * scale1
    scale2 = params["bn2_g"] / jnp.sqrt(params["bn2_rv"] + eps)
    shift2 = params["bn2_b"] - params["bn2_rm"] * scale2

    def layer(w, a_s, a_d, b, scale, shift, concat):
        hc = w.shape[1]
        c = hc // heads
        out_dim = hc if concat else c
        return (w.astype(jnp.bfloat16),
                _expand_att(a_s.reshape(heads, c), heads, c),
                _expand_att(a_d.reshape(heads, c), heads, c),
                b.reshape(1, out_dim).astype(jnp.float32),
                scale.reshape(1, out_dim).astype(jnp.float32),
                shift.reshape(1, out_dim).astype(jnp.float32),
                c, concat)

    c3 = params["w3"].shape[1] // heads
    layers = [
        layer(params["w1"], params["as1"], params["ad1"], params["b1"],
              scale1, shift1, True),
        layer(params["w2"], params["as2"], params["ad2"], params["b2"],
              scale2, shift2, True),
        layer(params["w3"], params["as3"], params["ad3"], params["b3"],
              jnp.ones((c3,), jnp.float32), jnp.zeros((c3,), jnp.float32),
              False),
    ]

    # Whole-graph fusion (one pallas_call, single grid step) when everything
    # fits comfortably in VMEM — the benchmark config (N=16) takes this path.
    if (not force_layered) and n_pad <= 512:
        out = _fused_forward(x_bf, adj, layers, heads, n_pad)
    else:
        out = _layered_forward(x_bf, adj, layers, heads, tm)
    return out[:n]


# --------------------------------------------------------------------------- #
# Pure-JAX f32 reference (numerical sanity check).
# --------------------------------------------------------------------------- #
def _ref_forward(x, adj, params, heads):
    eps = 1e-5

    def conv(x, w, a_s, a_d, bias, concat):
        n = x.shape[0]
        hc = w.shape[1]
        c = hc // heads
        xp = x @ w
        xph = xp.reshape(n, heads, c)
        al_s = jnp.einsum("nhc,hc->nh", xph, a_s)
        al_d = jnp.einsum("nhc,hc->nh", xph, a_d)
        e = al_d[:, None, :] + al_s[None, :, :]            # [dst, src, H]
        e = jnp.where(e > 0, e, 0.2 * e)
        e = jnp.where((adj > 0)[:, :, None], e, -1e30)
        attn = jax.nn.softmax(e, axis=1)
        out = jnp.einsum("ijh,jhc->ihc", attn, xph)
        if concat:
            return out.reshape(n, hc) + bias
        return out.mean(axis=1) + bias

    def bn(y, g, b, rm, rv):
        return (y - rm) / jnp.sqrt(rv + eps) * g + b

    h = conv(x, params["w1"], params["as1"], params["ad1"], params["b1"], True)
    h = jnp.where(h > 0, h, jnp.exp(h) - 1.0)
    h = bn(h, params["bn1_g"], params["bn1_b"], params["bn1_rm"], params["bn1_rv"])
    h = conv(h, params["w2"], params["as2"], params["ad2"], params["b2"], True)
    h = jnp.where(h > 0, h, jnp.exp(h) - 1.0)
    h = bn(h, params["bn2_g"], params["bn2_b"], params["bn2_rm"], params["bn2_rv"])
    return conv(h, params["w3"], params["as3"], params["ad3"], params["b3"], False)


# --------------------------------------------------------------------------- #
# Deterministic parameter init (shapes follow the PyTorch module __init__).
# --------------------------------------------------------------------------- #
def init_params(key, in_ch, hid, out_ch, heads):
    def glorot(k, shape):
        lim = jnp.sqrt(6.0 / (shape[0] + shape[-1]))
        return jax.random.uniform(k, shape, jnp.float32, -lim, lim)

    ks = jax.random.split(key, 16)
    hc = hid * heads
    c3 = out_ch // heads
    p = {}
    p["w1"] = glorot(ks[0], (in_ch, heads * hid))
    p["as1"] = glorot(ks[1], (heads, hid))
    p["ad1"] = glorot(ks[2], (heads, hid))
    p["b1"] = 0.1 * jax.random.normal(ks[3], (hc,), jnp.float32)
    p["w2"] = glorot(ks[4], (hc, heads * hid))
    p["as2"] = glorot(ks[5], (heads, hid))
    p["ad2"] = glorot(ks[6], (heads, hid))
    p["b2"] = 0.1 * jax.random.normal(ks[7], (hc,), jnp.float32)
    p["w3"] = glorot(ks[8], (hc, heads * c3))
    p["as3"] = glorot(ks[9], (heads, c3))
    p["ad3"] = glorot(ks[10], (heads, c3))
    p["b3"] = 0.1 * jax.random.normal(ks[11], (c3,), jnp.float32)
    p["bn1_g"] = 1.0 + 0.1 * jax.random.normal(ks[12], (hc,), jnp.float32)
    p["bn1_b"] = 0.1 * jax.random.normal(ks[13], (hc,), jnp.float32)
    p["bn1_rm"] = jnp.zeros((hc,), jnp.float32)
    p["bn1_rv"] = jnp.ones((hc,), jnp.float32)
    p["bn2_g"] = 1.0 + 0.1 * jax.random.normal(ks[14], (hc,), jnp.float32)
    p["bn2_b"] = 0.1 * jax.random.normal(ks[15], (hc,), jnp.float32)
    p["bn2_rm"] = jnp.zeros((hc,), jnp.float32)
    p["bn2_rv"] = jnp.ones((hc,), jnp.float32)
    return p


if __name__ == "__main__":
    N, IN_CH, HID, OUT_CH, HEADS = 16, 8, 8, 8, 4

    key = jax.random.PRNGKey(0)
    k_x, k_e, k_p = jax.random.split(key, 3)

    x = jax.random.normal(k_x, (N, IN_CH), jnp.float32)

    # Ring graph (both directions) plus 8 deterministic extra edges (offset 3,
    # so none are self loops and none collide with the ring edges).
    idx = jnp.arange(N)
    r = jax.random.randint(k_e, (8,), 0, N)
    src = jnp.concatenate([idx, (idx + 1) % N, r]).astype(jnp.int32)
    dst = jnp.concatenate([(idx + 1) % N, idx, (r + 3) % N]).astype(jnp.int32)
    edge_index = jnp.stack([src, dst])                  # [2, 40]

    params = init_params(k_p, IN_CH, HID, OUT_CH, HEADS)

    # Fused single-kernel path (what the benchmark size takes).
    out = jax.block_until_ready(gat_forward(x, edge_index, params, heads=HEADS))
    assert out.shape == (N, OUT_CH // HEADS)
    assert bool(jnp.all(jnp.isfinite(out)))

    # General tiled path (projection kernel + row-parallel attention kernel);
    # must agree with the fused kernel (same math, same precision).
    out_tiled = jax.block_until_ready(
        gat_forward(x, edge_index, params, heads=HEADS, force_layered=True))
    assert bool(jnp.allclose(out, out_tiled, rtol=2e-2, atol=2e-2))

    # Numerical sanity vs f32 pure-JAX reference (kernel uses bf16 MXU inputs
    # and approximate reciprocal, so the tolerance is loose).
    adj_f32 = jnp.maximum(
        jnp.zeros((N, N), jnp.float32).at[dst, src].set(1.0),
        jnp.eye(N, dtype=jnp.float32))
    ref = _ref_forward(x, adj_f32, params, HEADS)
    assert bool(jnp.allclose(out, ref, rtol=1e-1, atol=1e-1))

    print("KERNEL_OK")
</pallas_src>

<mosaic_0001>
module attributes {stable_mosaic.version = 11 : i64} {
  func.func @kernel(%arg0: i32, %arg1: memref<16x8xbf16, #tpu.memory_space<vmem>>, %arg2: memref<16x16xi8, #tpu.memory_space<vmem>>, %arg3: memref<8x32xbf16, #tpu.memory_space<vmem>>, %arg4: memref<32x4xf32, #tpu.memory_space<vmem>>, %arg5: memref<32x4xf32, #tpu.memory_space<vmem>>, %arg6: memref<1x32xf32, #tpu.memory_space<vmem>>, %arg7: memref<1x32xf32, #tpu.memory_space<vmem>>, %arg8: memref<1x32xf32, #tpu.memory_space<vmem>>, %arg9: memref<32x32xbf16, #tpu.memory_space<vmem>>, %arg10: memref<32x4xf32, #tpu.memory_space<vmem>>, %arg11: memref<32x4xf32, #tpu.memory_space<vmem>>, %arg12: memref<1x32xf32, #tpu.memory_space<vmem>>, %arg13: memref<1x32xf32, #tpu.memory_space<vmem>>, %arg14: memref<1x32xf32, #tpu.memory_space<vmem>>, %arg15: memref<32x8xbf16, #tpu.memory_space<vmem>>, %arg16: memref<8x4xf32, #tpu.memory_space<vmem>>, %arg17: memref<8x4xf32, #tpu.memory_space<vmem>>, %arg18: memref<1x2xf32, #tpu.memory_space<vmem>>, %arg19: memref<16x2xf32, #tpu.memory_space<vmem>>) attributes {dimension_semantics = [#tpu.dimension_semantics<arbitrary>], iteration_bounds = array<i64: 1>, scalar_prefetch = 0 : i64, scratch_operands = 0 : i64, tpu.core_type = #tpu.core_type<tc>, window_params = [{pipeline_mode = #tpu.pipeline_mode<synchronous>, transform_indices = @transform_0, window_bounds = array<i64: 16, 8>}, {pipeline_mode = #tpu.pipeline_mode<synchronous>, transform_indices = @transform_1, window_bounds = array<i64: 16, 16>}, {pipeline_mode = #tpu.pipeline_mode<synchronous>, transform_indices = @transform_2, window_bounds = array<i64: 8, 32>}, {pipeline_mode = #tpu.pipeline_mode<synchronous>, transform_indices = @transform_3, window_bounds = array<i64: 32, 4>}, {pipeline_mode = #tpu.pipeline_mode<synchronous>, transform_indices = @transform_4, window_bounds = array<i64: 32, 4>}, {pipeline_mode = #tpu.pipeline_mode<synchronous>, transform_indices = @transform_5, window_bounds = array<i64: 1, 32>}, {pipeline_mode = #tpu.pipeline_mode<synchronous>, transform_indices = @transform_6, window_bounds = array<i64: 1, 32>}, {pipeline_mode = #tpu.pipeline_mode<synchronous>, transform_indices = @transform_7, window_bounds = array<i64: 1, 32>}, {pipeline_mode = #tpu.pipeline_mode<synchronous>, transform_indices = @transform_8, window_bounds = array<i64: 32, 32>}, {pipeline_mode = #tpu.pipeline_mode<synchronous>, transform_indices = @transform_9, window_bounds = array<i64: 32, 4>}, {pipeline_mode = #tpu.pipeline_mode<synchronous>, transform_indices = @transform_10, window_bounds = array<i64: 32, 4>}, {pipeline_mode = #tpu.pipeline_mode<synchronous>, transform_indices = @transform_11, window_bounds = array<i64: 1, 32>}, {pipeline_mode = #tpu.pipeline_mode<synchronous>, transform_indices = @transform_12, window_bounds = array<i64: 1, 32>}, {pipeline_mode = #tpu.pipeline_mode<synchronous>, transform_indices = @transform_13, window_bounds = array<i64: 1, 32>}, {pipeline_mode = #tpu.pipeline_mode<synchronous>, transform_indices = @transform_14, window_bounds = array<i64: 32, 8>}, {pipeline_mode = #tpu.pipeline_mode<synchronous>, transform_indices = @transform_15, window_bounds = array<i64: 8, 4>}, {pipeline_mode = #tpu.pipeline_mode<synchronous>, transform_indices = @transform_16, window_bounds = array<i64: 8, 4>}, {pipeline_mode = #tpu.pipeline_mode<synchronous>, transform_indices = @transform_17, window_bounds = array<i64: 1, 2>}, {pipeline_mode = #tpu.pipeline_mode<synchronous>, transform_indices = @transform_18, window_bounds = array<i64: 16, 2>}]} {
    %c0 = arith.constant 0 : index
    %c0_0 = arith.constant 0 : index
    %0 = vector.load %arg2[%c0, %c0_0] : memref<16x16xi8, #tpu.memory_space<vmem>>, vector<16x16xi8>
    %1 = arith.sitofp %0 : vector<16x16xi8> to vector<16x16xf32>
    %cst = arith.constant 0.000000e+00 : f32
    %2 = vector.broadcast %cst : f32 to vector<16x16xf32>
    %3 = arith.cmpf ogt, %1, %2 : vector<16x16xf32>
    %c0_1 = arith.constant 0 : index
    %c0_2 = arith.constant 0 : index
    %4 = vector.load %arg1[%c0_1, %c0_2] : memref<16x8xbf16, #tpu.memory_space<vmem>>, vector<16x8xbf16>
    %c0_3 = arith.constant 0 : index
    %c0_4 = arith.constant 0 : index
    %5 = vector.load %arg3[%c0_3, %c0_4] : memref<8x32xbf16, #tpu.memory_space<vmem>>, vector<8x32xbf16>
    %c0_5 = arith.constant 0 : index
    %c0_6 = arith.constant 0 : index
    %6 = vector.load %arg4[%c0_5, %c0_6] : memref<32x4xf32, #tpu.memory_space<vmem>>, vector<32x4xf32>
    %c0_7 = arith.constant 0 : index
    %c0_8 = arith.constant 0 : index
    %7 = vector.load %arg5[%c0_7, %c0_8] : memref<32x4xf32, #tpu.memory_space<vmem>>, vector<32x4xf32>
    %c0_9 = arith.constant 0 : index
    %c0_10 = arith.constant 0 : index
    %8 = vector.load %arg6[%c0_9, %c0_10] : memref<1x32xf32, #tpu.memory_space<vmem>>, vector<1x32xf32>
    %c0_11 = arith.constant 0 : index
    %c0_12 = arith.constant 0 : index
    %9 = vector.load %arg7[%c0_11, %c0_12] : memref<1x32xf32, #tpu.memory_space<vmem>>, vector<1x32xf32>
    %c0_13 = arith.constant 0 : index
    %c0_14 = arith.constant 0 : index
    %10 = vector.load %arg8[%c0_13, %c0_14] : memref<1x32xf32, #tpu.memory_space<vmem>>, vector<1x32xf32>
    %cst_15 = arith.constant dense<0.000000e+00> : vector<16x32xf32>
    %11 = tpu.matmul %4, %5, %cst_15 {dimension_numbers = #tpu.dot_dimension_numbers<[1], [0], [0], [1], [0, 0, 1, 1], [], []>} : vector<16x8xbf16>, vector<8x32xbf16>, vector<16x32xf32> -> vector<16x32xf32>
    %12 = arith.truncf %11 : vector<16x32xf32> to vector<16x32xbf16>
    %cst_16 = arith.constant dense<0.000000e+00> : vector<16x4xf32>
    %13 = tpu.matmul %11, %7, %cst_16 {dimension_numbers = #tpu.dot_dimension_numbers<[1], [0], [0], [1], [0, 0, 1, 1], [], []>} : vector<16x32xf32>, vector<32x4xf32>, vector<16x4xf32> -> vector<16x4xf32>
    %cst_17 = arith.constant dense<0.000000e+00> : vector<4x16xf32>
    %14 = tpu.matmul %6, %11, %cst_17 {dimension_numbers = #tpu.dot_dimension_numbers<[0], [1], [1], [0], [0, 1, 1, 0], [], []>} : vector<32x4xf32>, vector<16x32xf32>, vector<4x16xf32> -> vector<4x16xf32>
    %15 = vector.extract_strided_slice %13 {offsets = [0, 0], sizes = [16, 1], strides = [1, 1]} : vector<16x4xf32> to vector<16x1xf32>
    %16 = vector.extract_strided_slice %14 {offsets = [0, 0], sizes = [1, 16], strides = [1, 1]} : vector<4x16xf32> to vector<1x16xf32>
    %17 = vector.broadcast %15 : vector<16x1xf32> to vector<16x16xf32>
    %18 = vector.broadcast %16 : vector<1x16xf32> to vector<16x16xf32>
    %19 = arith.addf %17, %18 : vector<16x16xf32>
    %cst_18 = arith.constant 0.000000e+00 : f32
    %20 = vector.broadcast %cst_18 : f32 to vector<16x16xf32>
    %21 = arith.cmpf ogt, %19, %20 : vector<16x16xf32>
    %cst_19 = arith.constant 2.000000e-01 : f32
    %22 = vector.broadcast %cst_19 : f32 to vector<16x16xf32>
    %23 = arith.mulf %22, %19 : vector<16x16xf32>
    %24 = arith.select %21, %19, %23 : vector<16x16xi1>, vector<16x16xf32>
    %cst_20 = arith.constant -1.000000e+30 : f32
    %25 = vector.broadcast %cst_20 : f32 to vector<16x16xf32>
    %26 = arith.select %3, %24, %25 : vector<16x16xi1>, vector<16x16xf32>
    %cst_21 = arith.constant dense<0xFF800000> : vector<16xf32>
    %27 = vector.multi_reduction <maximumf>, %26, %cst_21 [1] : vector<16x16xf32> to vector<16xf32>
    %28 = vector.shape_cast %27 : vector<16xf32> to vector<16x1xf32>
    %29 = vector.broadcast %28 : vector<16x1xf32> to vector<16x16xf32>
    %30 = arith.subf %26, %29 : vector<16x16xf32>
    %31 = math.exp %30 : vector<16x16xf32>
    %cst_22 = arith.constant dense<0.000000e+00> : vector<16xf32>
    %32 = vector.multi_reduction <add>, %31, %cst_22 [1] : vector<16x16xf32> to vector<16xf32>
    %33 = vector.shape_cast %32 : vector<16xf32> to vector<16x1xf32>
    %34 = arith.truncf %31 : vector<16x16xf32> to vector<16x16xbf16>
    %35 = vector.extract_strided_slice %12 {offsets = [0, 0], sizes = [16, 8], strides = [1, 1]} : vector<16x32xbf16> to vector<16x8xbf16>
    %cst_23 = arith.constant dense<0.000000e+00> : vector<16x8xf32>
    %36 = tpu.matmul %34, %35, %cst_23 {dimension_numbers = #tpu.dot_dimension_numbers<[1], [0], [0], [1], [0, 0, 1, 1], [], []>} : vector<16x16xbf16>, vector<16x8xbf16>, vector<16x8xf32> -> vector<16x8xf32>
    %37 = tpu.reciprocal %33 {approx = true} : vector<16x1xf32> -> vector<16x1xf32>
    %38 = vector.broadcast %37 : vector<16x1xf32> to vector<16x8xf32>
    %39 = arith.mulf %36, %38 : vector<16x8xf32>
    %40 = vector.extract_strided_slice %13 {offsets = [0, 1], sizes = [16, 1], strides = [1, 1]} : vector<16x4xf32> to vector<16x1xf32>
    %41 = vector.extract_strided_slice %14 {offsets = [1, 0], sizes = [1, 16], strides = [1, 1]} : vector<4x16xf32> to vector<1x16xf32>
    %42 = vector.broadcast %40 : vector<16x1xf32> to vector<16x16xf32>
    %43 = vector.broadcast %41 : vector<1x16xf32> to vector<16x16xf32>
    %44 = arith.addf %42, %43 : vector<16x16xf32>
    %cst_24 = arith.constant 0.000000e+00 : f32
    %45 = vector.broadcast %cst_24 : f32 to vector<16x16xf32>
    %46 = arith.cmpf ogt, %44, %45 : vector<16x16xf32>
    %cst_25 = arith.constant 2.000000e-01 : f32
    %47 = vector.broadcast %cst_25 : f32 to vector<16x16xf32>
    %48 = arith.mulf %47, %44 : vector<16x16xf32>
    %49 = arith.select %46, %44, %48 : vector<16x16xi1>, vector<16x16xf32>
    %cst_26 = arith.constant -1.000000e+30 : f32
    %50 = vector.broadcast %cst_26 : f32 to vector<16x16xf32>
    %51 = arith.select %3, %49, %50 : vector<16x16xi1>, vector<16x16xf32>
    %cst_27 = arith.constant dense<0xFF800000> : vector<16xf32>
    %52 = vector.multi_reduction <maximumf>, %51, %cst_27 [1] : vector<16x16xf32> to vector<16xf32>
    %53 = vector.shape_cast %52 : vector<16xf32> to vector<16x1xf32>
    %54 = vector.broadcast %53 : vector<16x1xf32> to vector<16x16xf32>
    %55 = arith.subf %51, %54 : vector<16x16xf32>
    %56 = math.exp %55 : vector<16x16xf32>
    %cst_28 = arith.constant dense<0.000000e+00> : vector<16xf32>
    %57 = vector.multi_reduction <add>, %56, %cst_28 [1] : vector<16x16xf32> to vector<16xf32>
    %58 = vector.shape_cast %57 : vector<16xf32> to vector<16x1xf32>
    %59 = arith.truncf %56 : vector<16x16xf32> to vector<16x16xbf16>
    %60 = vector.extract_strided_slice %12 {offsets = [0, 8], sizes = [16, 8], strides = [1, 1]} : vector<16x32xbf16> to vector<16x8xbf16>
    %cst_29 = arith.constant dense<0.000000e+00> : vector<16x8xf32>
    %61 = tpu.matmul %59, %60, %cst_29 {dimension_numbers = #tpu.dot_dimension_numbers<[1], [0], [0], [1], [0, 0, 1, 1], [], []>} : vector<16x16xbf16>, vector<16x8xbf16>, vector<16x8xf32> -> vector<16x8xf32>
    %62 = tpu.reciprocal %58 {approx = true} : vector<16x1xf32> -> vector<16x1xf32>
    %63 = vector.broadcast %62 : vector<16x1xf32> to vector<16x8xf32>
    %64 = arith.mulf %61, %63 : vector<16x8xf32>
    %65 = vector.extract_strided_slice %13 {offsets = [0, 2], sizes = [16, 1], strides = [1, 1]} : vector<16x4xf32> to vector<16x1xf32>
    %66 = vector.extract_strided_slice %14 {offsets = [2, 0], sizes = [1, 16], strides = [1, 1]} : vector<4x16xf32> to vector<1x16xf32>
    %67 = vector.broadcast %65 : vector<16x1xf32> to vector<16x16xf32>
    %68 = vector.broadcast %66 : vector<1x16xf32> to vector<16x16xf32>
    %69 = arith.addf %67, %68 : vector<16x16xf32>
    %cst_30 = arith.constant 0.000000e+00 : f32
    %70 = vector.broadcast %cst_30 : f32 to vector<16x16xf32>
    %71 = arith.cmpf ogt, %69, %70 : vector<16x16xf32>
    %cst_31 = arith.constant 2.000000e-01 : f32
    %72 = vector.broadcast %cst_31 : f32 to vector<16x16xf32>
    %73 = arith.mulf %72, %69 : vector<16x16xf32>
    %74 = arith.select %71, %69, %73 : vector<16x16xi1>, vector<16x16xf32>
    %cst_32 = arith.constant -1.000000e+30 : f32
    %75 = vector.broadcast %cst_32 : f32 to vector<16x16xf32>
    %76 = arith.select %3, %74, %75 : vector<16x16xi1>, vector<16x16xf32>
    %cst_33 = arith.constant dense<0xFF800000> : vector<16xf32>
    %77 = vector.multi_reduction <maximumf>, %76, %cst_33 [1] : vector<16x16xf32> to vector<16xf32>
    %78 = vector.shape_cast %77 : vector<16xf32> to vector<16x1xf32>
    %79 = vector.broadcast %78 : vector<16x1xf32> to vector<16x16xf32>
    %80 = arith.subf %76, %79 : vector<16x16xf32>
    %81 = math.exp %80 : vector<16x16xf32>
    %cst_34 = arith.constant dense<0.000000e+00> : vector<16xf32>
    %82 = vector.multi_reduction <add>, %81, %cst_34 [1] : vector<16x16xf32> to vector<16xf32>
    %83 = vector.shape_cast %82 : vector<16xf32> to vector<16x1xf32>
    %84 = arith.truncf %81 : vector<16x16xf32> to vector<16x16xbf16>
    %85 = vector.extract_strided_slice %12 {offsets = [0, 16], sizes = [16, 8], strides = [1, 1]} : vector<16x32xbf16> to vector<16x8xbf16>
    %cst_35 = arith.constant dense<0.000000e+00> : vector<16x8xf32>
    %86 = tpu.matmul %84, %85, %cst_35 {dimension_numbers = #tpu.dot_dimension_numbers<[1], [0], [0], [1], [0, 0, 1, 1], [], []>} : vector<16x16xbf16>, vector<16x8xbf16>, vector<16x8xf32> -> vector<16x8xf32>
    %87 = tpu.reciprocal %83 {approx = true} : vector<16x1xf32> -> vector<16x1xf32>
    %88 = vector.broadcast %87 : vector<16x1xf32> to vector<16x8xf32>
    %89 = arith.mulf %86, %88 : vector<16x8xf32>
    %90 = vector.extract_strided_slice %13 {offsets = [0, 3], sizes = [16, 1], strides = [1, 1]} : vector<16x4xf32> to vector<16x1xf32>
    %91 = vector.extract_strided_slice %14 {offsets = [3, 0], sizes = [1, 16], strides = [1, 1]} : vector<4x16xf32> to vector<1x16xf32>
    %92 = vector.broadcast %90 : vector<16x1xf32> to vector<16x16xf32>
    %93 = vector.broadcast %91 : vector<1x16xf32> to vector<16x16xf32>
    %94 = arith.addf %92, %93 : vector<16x16xf32>
    %cst_36 = arith.constant 0.000000e+00 : f32
    %95 = vector.broadcast %cst_36 : f32 to vector<16x16xf32>
    %96 = arith.cmpf ogt, %94, %95 : vector<16x16xf32>
    %cst_37 = arith.constant 2.000000e-01 : f32
    %97 = vector.broadcast %cst_37 : f32 to vector<16x16xf32>
    %98 = arith.mulf %97, %94 : vector<16x16xf32>
    %99 = arith.select %96, %94, %98 : vector<16x16xi1>, vector<16x16xf32>
    %cst_38 = arith.constant -1.000000e+30 : f32
    %100 = vector.broadcast %cst_38 : f32 to vector<16x16xf32>
    %101 = arith.select %3, %99, %100 : vector<16x16xi1>, vector<16x16xf32>
    %cst_39 = arith.constant dense<0xFF800000> : vector<16xf32>
    %102 = vector.multi_reduction <maximumf>, %101, %cst_39 [1] : vector<16x16xf32> to vector<16xf32>
    %103 = vector.shape_cast %102 : vector<16xf32> to vector<16x1xf32>
    %104 = vector.broadcast %103 : vector<16x1xf32> to vector<16x16xf32>
    %105 = arith.subf %101, %104 : vector<16x16xf32>
    %106 = math.exp %105 : vector<16x16xf32>
    %cst_40 = arith.constant dense<0.000000e+00> : vector<16xf32>
    %107 = vector.multi_reduction <add>, %106, %cst_40 [1] : vector<16x16xf32> to vector<16xf32>
    %108 = vector.shape_cast %107 : vector<16xf32> to vector<16x1xf32>
    %109 = arith.truncf %106 : vector<16x16xf32> to vector<16x16xbf16>
    %110 = vector.extract_strided_slice %12 {offsets = [0, 24], sizes = [16, 8], strides = [1, 1]} : vector<16x32xbf16> to vector<16x8xbf16>
    %cst_41 = arith.constant dense<0.000000e+00> : vector<16x8xf32>
    %111 = tpu.matmul %109, %110, %cst_41 {dimension_numbers = #tpu.dot_dimension_numbers<[1], [0], [0], [1], [0, 0, 1, 1], [], []>} : vector<16x16xbf16>, vector<16x8xbf16>, vector<16x8xf32> -> vector<16x8xf32>
    %112 = tpu.reciprocal %108 {approx = true} : vector<16x1xf32> -> vector<16x1xf32>
    %113 = vector.broadcast %112 : vector<16x1xf32> to vector<16x8xf32>
    %114 = arith.mulf %111, %113 : vector<16x8xf32>
    %115 = tpu.concatenate %39, %64, %89, %114 in 1 : vector<16x8xf32>, vector<16x8xf32>, vector<16x8xf32>, vector<16x8xf32> -> vector<16x32xf32>
    %116 = vector.broadcast %8 : vector<1x32xf32> to vector<16x32xf32>
    %117 = arith.addf %115, %116 : vector<16x32xf32>
    %cst_42 = arith.constant 0.000000e+00 : f32
    %118 = vector.broadcast %cst_42 : f32 to vector<16x32xf32>
    %119 = arith.cmpf ogt, %117, %118 : vector<16x32xf32>
    %120 = math.exp %117 : vector<16x32xf32>
    %cst_43 = arith.constant 1.000000e+00 : f32
    %121 = vector.broadcast %cst_43 : f32 to vector<16x32xf32>
    %122 = arith.subf %120, %121 : vector<16x32xf32>
    %123 = arith.select %119, %117, %122 : vector<16x32xi1>, vector<16x32xf32>
    %124 = vector.broadcast %9 : vector<1x32xf32> to vector<16x32xf32>
    %125 = arith.mulf %123, %124 : vector<16x32xf32>
    %126 = vector.broadcast %10 : vector<1x32xf32> to vector<16x32xf32>
    %127 = arith.addf %125, %126 : vector<16x32xf32>
    %128 = arith.truncf %127 : vector<16x32xf32> to vector<16x32xbf16>
    %c0_44 = arith.constant 0 : index
    %c0_45 = arith.constant 0 : index
    %129 = vector.load %arg9[%c0_44, %c0_45] : memref<32x32xbf16, #tpu.memory_space<vmem>>, vector<32x32xbf16>
    %c0_46 = arith.constant 0 : index
    %c0_47 = arith.constant 0 : index
    %130 = vector.load %arg10[%c0_46, %c0_47] : memref<32x4xf32, #tpu.memory_space<vmem>>, vector<32x4xf32>
    %c0_48 = arith.constant 0 : index
    %c0_49 = arith.constant 0 : index
    %131 = vector.load %arg11[%c0_48, %c0_49] : memref<32x4xf32, #tpu.memory_space<vmem>>, vector<32x4xf32>
    %c0_50 = arith.constant 0 : index
    %c0_51 = arith.constant 0 : index
    %132 = vector.load %arg12[%c0_50, %c0_51] : memref<1x32xf32, #tpu.memory_space<vmem>>, vector<1x32xf32>
    %c0_52 = arith.constant 0 : index
    %c0_53 = arith.constant 0 : index
    %133 = vector.load %arg13[%c0_52, %c0_53] : memref<1x32xf32, #tpu.memory_space<vmem>>, vector<1x32xf32>
    %c0_54 = arith.constant 0 : index
    %c0_55 = arith.constant 0 : index
    %134 = vector.load %arg14[%c0_54, %c0_55] : memref<1x32xf32, #tpu.memory_space<vmem>>, vector<1x32xf32>
    %cst_56 = arith.constant dense<0.000000e+00> : vector<16x32xf32>
    %135 = tpu.matmul %128, %129, %cst_56 {dimension_numbers = #tpu.dot_dimension_numbers<[1], [0], [0], [1], [0, 0, 1, 1], [], []>} : vector<16x32xbf16>, vector<32x32xbf16>, vector<16x32xf32> -> vector<16x32xf32>
    %136 = arith.truncf %135 : vector<16x32xf32> to vector<16x32xbf16>
    %cst_57 = arith.constant dense<0.000000e+00> : vector<16x4xf32>
    %137 = tpu.matmul %135, %131, %cst_57 {dimension_numbers = #tpu.dot_dimension_numbers<[1], [0], [0], [1], [0, 0, 1, 1], [], []>} : vector<16x32xf32>, vector<32x4xf32>, vector<16x4xf32> -> vector<16x4xf32>
    %cst_58 = arith.constant dense<0.000000e+00> : vector<4x16xf32>
    %138 = tpu.matmul %130, %135, %cst_58 {dimension_numbers = #tpu.dot_dimension_numbers<[0], [1], [1], [0], [0, 1, 1, 0], [], []>} : vector<32x4xf32>, vector<16x32xf32>, vector<4x16xf32> -> vector<4x16xf32>
    %139 = vector.extract_strided_slice %137 {offsets = [0, 0], sizes = [16, 1], strides = [1, 1]} : vector<16x4xf32> to vector<16x1xf32>
    %140 = vector.extract_strided_slice %138 {offsets = [0, 0], sizes = [1, 16], strides = [1, 1]} : vector<4x16xf32> to vector<1x16xf32>
    %141 = vector.broadcast %139 : vector<16x1xf32> to vector<16x16xf32>
    %142 = vector.broadcast %140 : vector<1x16xf32> to vector<16x16xf32>
    %143 = arith.addf %141, %142 : vector<16x16xf32>
    %cst_59 = arith.constant 0.000000e+00 : f32
    %144 = vector.broadcast %cst_59 : f32 to vector<16x16xf32>
    %145 = arith.cmpf ogt, %143, %144 : vector<16x16xf32>
    %cst_60 = arith.constant 2.000000e-01 : f32
    %146 = vector.broadcast %cst_60 : f32 to vector<16x16xf32>
    %147 = arith.mulf %146, %143 : vector<16x16xf32>
    %148 = arith.select %145, %143, %147 : vector<16x16xi1>, vector<16x16xf32>
    %cst_61 = arith.constant -1.000000e+30 : f32
    %149 = vector.broadcast %cst_61 : f32 to vector<16x16xf32>
    %150 = arith.select %3, %148, %149 : vector<16x16xi1>, vector<16x16xf32>
    %cst_62 = arith.constant dense<0xFF800000> : vector<16xf32>
    %151 = vector.multi_reduction <maximumf>, %150, %cst_62 [1] : vector<16x16xf32> to vector<16xf32>
    %152 = vector.shape_cast %151 : vector<16xf32> to vector<16x1xf32>
    %153 = vector.broadcast %152 : vector<16x1xf32> to vector<16x16xf32>
    %154 = arith.subf %150, %153 : vector<16x16xf32>
    %155 = math.exp %154 : vector<16x16xf32>
    %cst_63 = arith.constant dense<0.000000e+00> : vector<16xf32>
    %156 = vector.multi_reduction <add>, %155, %cst_63 [1] : vector<16x16xf32> to vector<16xf32>
    %157 = vector.shape_cast %156 : vector<16xf32> to vector<16x1xf32>
    %158 = arith.truncf %155 : vector<16x16xf32> to vector<16x16xbf16>
    %159 = vector.extract_strided_slice %136 {offsets = [0, 0], sizes = [16, 8], strides = [1, 1]} : vector<16x32xbf16> to vector<16x8xbf16>
    %cst_64 = arith.constant dense<0.000000e+00> : vector<16x8xf32>
    %160 = tpu.matmul %158, %159, %cst_64 {dimension_numbers = #tpu.dot_dimension_numbers<[1], [0], [0], [1], [0, 0, 1, 1], [], []>} : vector<16x16xbf16>, vector<16x8xbf16>, vector<16x8xf32> -> vector<16x8xf32>
    %161 = tpu.reciprocal %157 {approx = true} : vector<16x1xf32> -> vector<16x1xf32>
    %162 = vector.broadcast %161 : vector<16x1xf32> to vector<16x8xf32>
    %163 = arith.mulf %160, %162 : vector<16x8xf32>
    %164 = vector.extract_strided_slice %137 {offsets = [0, 1], sizes = [16, 1], strides = [1, 1]} : vector<16x4xf32> to vector<16x1xf32>
    %165 = vector.extract_strided_slice %138 {offsets = [1, 0], sizes = [1, 16], strides = [1, 1]} : vector<4x16xf32> to vector<1x16xf32>
    %166 = vector.broadcast %164 : vector<16x1xf32> to vector<16x16xf32>
    %167 = vector.broadcast %165 : vector<1x16xf32> to vector<16x16xf32>
    %168 = arith.addf %166, %167 : vector<16x16xf32>
    %cst_65 = arith.constant 0.000000e+00 : f32
    %169 = vector.broadcast %cst_65 : f32 to vector<16x16xf32>
    %170 = arith.cmpf ogt, %168, %169 : vector<16x16xf32>
    %cst_66 = arith.constant 2.000000e-01 : f32
    %171 = vector.broadcast %cst_66 : f32 to vector<16x16xf32>
    %172 = arith.mulf %171, %168 : vector<16x16xf32>
    %173 = arith.select %170, %168, %172 : vector<16x16xi1>, vector<16x16xf32>
    %cst_67 = arith.constant -1.000000e+30 : f32
    %174 = vector.broadcast %cst_67 : f32 to vector<16x16xf32>
    %175 = arith.select %3, %173, %174 : vector<16x16xi1>, vector<16x16xf32>
    %cst_68 = arith.constant dense<0xFF800000> : vector<16xf32>
    %176 = vector.multi_reduction <maximumf>, %175, %cst_68 [1] : vector<16x16xf32> to vector<16xf32>
    %177 = vector.shape_cast %176 : vector<16xf32> to vector<16x1xf32>
    %178 = vector.broadcast %177 : vector<16x1xf32> to vector<16x16xf32>
    %179 = arith.subf %175, %178 : vector<16x16xf32>
    %180 = math.exp %179 : vector<16x16xf32>
    %cst_69 = arith.constant dense<0.000000e+00> : vector<16xf32>
    %181 = vector.multi_reduction <add>, %180, %cst_69 [1] : vector<16x16xf32> to vector<16xf32>
    %182 = vector.shape_cast %181 : vector<16xf32> to vector<16x1xf32>
    %183 = arith.truncf %180 : vector<16x16xf32> to vector<16x16xbf16>
    %184 = vector.extract_strided_slice %136 {offsets = [0, 8], sizes = [16, 8], strides = [1, 1]} : vector<16x32xbf16> to vector<16x8xbf16>
    %cst_70 = arith.constant dense<0.000000e+00> : vector<16x8xf32>
    %185 = tpu.matmul %183, %184, %cst_70 {dimension_numbers = #tpu.dot_dimension_numbers<[1], [0], [0], [1], [0, 0, 1, 1], [], []>} : vector<16x16xbf16>, vector<16x8xbf16>, vector<16x8xf32> -> vector<16x8xf32>
    %186 = tpu.reciprocal %182 {approx = true} : vector<16x1xf32> -> vector<16x1xf32>
    %187 = vector.broadcast %186 : vector<16x1xf32> to vector<16x8xf32>
    %188 = arith.mulf %185, %187 : vector<16x8xf32>
    %189 = vector.extract_strided_slice %137 {offsets = [0, 2], sizes = [16, 1], strides = [1, 1]} : vector<16x4xf32> to vector<16x1xf32>
    %190 = vector.extract_strided_slice %138 {offsets = [2, 0], sizes = [1, 16], strides = [1, 1]} : vector<4x16xf32> to vector<1x16xf32>
    %191 = vector.broadcast %189 : vector<16x1xf32> to vector<16x16xf32>
    %192 = vector.broadcast %190 : vector<1x16xf32> to vector<16x16xf32>
    %193 = arith.addf %191, %192 : vector<16x16xf32>
    %cst_71 = arith.constant 0.000000e+00 : f32
    %194 = vector.broadcast %cst_71 : f32 to vector<16x16xf32>
    %195 = arith.cmpf ogt, %193, %194 : vector<16x16xf32>
    %cst_72 = arith.constant 2.000000e-01 : f32
    %196 = vector.broadcast %cst_72 : f32 to vector<16x16xf32>
    %197 = arith.mulf %196, %193 : vector<16x16xf32>
    %198 = arith.select %195, %193, %197 : vector<16x16xi1>, vector<16x16xf32>
    %cst_73 = arith.constant -1.000000e+30 : f32
    %199 = vector.broadcast %cst_73 : f32 to vector<16x16xf32>
    %200 = arith.select %3, %198, %199 : vector<16x16xi1>, vector<16x16xf32>
    %cst_74 = arith.constant dense<0xFF800000> : vector<16xf32>
    %201 = vector.multi_reduction <maximumf>, %200, %cst_74 [1] : vector<16x16xf32> to vector<16xf32>
    %202 = vector.shape_cast %201 : vector<16xf32> to vector<16x1xf32>
    %203 = vector.broadcast %202 : vector<16x1xf32> to vector<16x16xf32>
    %204 = arith.subf %200, %203 : vector<16x16xf32>
    %205 = math.exp %204 : vector<16x16xf32>
    %cst_75 = arith.constant dense<0.000000e+00> : vector<16xf32>
    %206 = vector.multi_reduction <add>, %205, %cst_75 [1] : vector<16x16xf32> to vector<16xf32>
    %207 = vector.shape_cast %206 : vector<16xf32> to vector<16x1xf32>
    %208 = arith.truncf %205 : vector<16x16xf32> to vector<16x16xbf16>
    %209 = vector.extract_strided_slice %136 {offsets = [0, 16], sizes = [16, 8], strides = [1, 1]} : vector<16x32xbf16> to vector<16x8xbf16>
    %cst_76 = arith.constant dense<0.000000e+00> : vector<16x8xf32>
    %210 = tpu.matmul %208, %209, %cst_76 {dimension_numbers = #tpu.dot_dimension_numbers<[1], [0], [0], [1], [0, 0, 1, 1], [], []>} : vector<16x16xbf16>, vector<16x8xbf16>, vector<16x8xf32> -> vector<16x8xf32>
    %211 = tpu.reciprocal %207 {approx = true} : vector<16x1xf32> -> vector<16x1xf32>
    %212 = vector.broadcast %211 : vector<16x1xf32> to vector<16x8xf32>
    %213 = arith.mulf %210, %212 : vector<16x8xf32>
    %214 = vector.extract_strided_slice %137 {offsets = [0, 3], sizes = [16, 1], strides = [1, 1]} : vector<16x4xf32> to vector<16x1xf32>
    %215 = vector.extract_strided_slice %138 {offsets = [3, 0], sizes = [1, 16], strides = [1, 1]} : vector<4x16xf32> to vector<1x16xf32>
    %216 = vector.broadcast %214 : vector<16x1xf32> to vector<16x16xf32>
    %217 = vector.broadcast %215 : vector<1x16xf32> to vector<16x16xf32>
    %218 = arith.addf %216, %217 : vector<16x16xf32>
    %cst_77 = arith.constant 0.000000e+00 : f32
    %219 = vector.broadcast %cst_77 : f32 to vector<16x16xf32>
    %220 = arith.cmpf ogt, %218, %219 : vector<16x16xf32>
    %cst_78 = arith.constant 2.000000e-01 : f32
    %221 = vector.broadcast %cst_78 : f32 to vector<16x16xf32>
    %222 = arith.mulf %221, %218 : vector<16x16xf32>
    %223 = arith.select %220, %218, %222 : vector<16x16xi1>, vector<16x16xf32>
    %cst_79 = arith.constant -1.000000e+30 : f32
    %224 = vector.broadcast %cst_79 : f32 to vector<16x16xf32>
    %225 = arith.select %3, %223, %224 : vector<16x16xi1>, vector<16x16xf32>
    %cst_80 = arith.constant dense<0xFF800000> : vector<16xf32>
    %226 = vector.multi_reduction <maximumf>, %225, %cst_80 [1] : vector<16x16xf32> to vector<16xf32>
    %227 = vector.shape_cast %226 : vector<16xf32> to vector<16x1xf32>
    %228 = vector.broadcast %227 : vector<16x1xf32> to vector<16x16xf32>
    %229 = arith.subf %225, %228 : vector<16x16xf32>
    %230 = math.exp %229 : vector<16x16xf32>
    %cst_81 = arith.constant dense<0.000000e+00> : vector<16xf32>
    %231 = vector.multi_reduction <add>, %230, %cst_81 [1] : vector<16x16xf32> to vector<16xf32>
    %232 = vector.shape_cast %231 : vector<16xf32> to vector<16x1xf32>
    %233 = arith.truncf %230 : vector<16x16xf32> to vector<16x16xbf16>
    %234 = vector.extract_strided_slice %136 {offsets = [0, 24], sizes = [16, 8], strides = [1, 1]} : vector<16x32xbf16> to vector<16x8xbf16>
    %cst_82 = arith.constant dense<0.000000e+00> : vector<16x8xf32>
    %235 = tpu.matmul %233, %234, %cst_82 {dimension_numbers = #tpu.dot_dimension_numbers<[1], [0], [0], [1], [0, 0, 1, 1], [], []>} : vector<16x16xbf16>, vector<16x8xbf16>, vector<16x8xf32> -> vector<16x8xf32>
    %236 = tpu.reciprocal %232 {approx = true} : vector<16x1xf32> -> vector<16x1xf32>
    %237 = vector.broadcast %236 : vector<16x1xf32> to vector<16x8xf32>
    %238 = arith.mulf %235, %237 : vector<16x8xf32>
    %239 = tpu.concatenate %163, %188, %213, %238 in 1 : vector<16x8xf32>, vector<16x8xf32>, vector<16x8xf32>, vector<16x8xf32> -> vector<16x32xf32>
    %240 = vector.broadcast %132 : vector<1x32xf32> to vector<16x32xf32>
    %241 = arith.addf %239, %240 : vector<16x32xf32>
    %cst_83 = arith.constant 0.000000e+00 : f32
    %242 = vector.broadcast %cst_83 : f32 to vector<16x32xf32>
    %243 = arith.cmpf ogt, %241, %242 : vector<16x32xf32>
    %244 = math.exp %241 : vector<16x32xf32>
    %cst_84 = arith.constant 1.000000e+00 : f32
    %245 = vector.broadcast %cst_84 : f32 to vector<16x32xf32>
    %246 = arith.subf %244, %245 : vector<16x32xf32>
    %247 = arith.select %243, %241, %246 : vector<16x32xi1>, vector<16x32xf32>
    %248 = vector.broadcast %133 : vector<1x32xf32> to vector<16x32xf32>
    %249 = arith.mulf %247, %248 : vector<16x32xf32>
    %250 = vector.broadcast %134 : vector<1x32xf32> to vector<16x32xf32>
    %251 = arith.addf %249, %250 : vector<16x32xf32>
    %252 = arith.truncf %251 : vector<16x32xf32> to vector<16x32xbf16>
    %c0_85 = arith.constant 0 : index
    %c0_86 = arith.constant 0 : index
    %253 = vector.load %arg15[%c0_85, %c0_86] : memref<32x8xbf16, #tpu.memory_space<vmem>>, vector<32x8xbf16>
    %c0_87 = arith.constant 0 : index
    %c0_88 = arith.constant 0 : index
    %254 = vector.load %arg16[%c0_87, %c0_88] : memref<8x4xf32, #tpu.memory_space<vmem>>, vector<8x4xf32>
    %c0_89 = arith.constant 0 : index
    %c0_90 = arith.constant 0 : index
    %255 = vector.load %arg17[%c0_89, %c0_90] : memref<8x4xf32, #tpu.memory_space<vmem>>, vector<8x4xf32>
    %c0_91 = arith.constant 0 : index
    %c0_92 = arith.constant 0 : index
    %256 = vector.load %arg18[%c0_91, %c0_92] : memref<1x2xf32, #tpu.memory_space<vmem>>, vector<1x2xf32>
    %cst_93 = arith.constant dense<0.000000e+00> : vector<16x8xf32>
    %257 = tpu.matmul %252, %253, %cst_93 {dimension_numbers = #tpu.dot_dimension_numbers<[1], [0], [0], [1], [0, 0, 1, 1], [], []>} : vector<16x32xbf16>, vector<32x8xbf16>, vector<16x8xf32> -> vector<16x8xf32>
    %258 = arith.truncf %257 : vector<16x8xf32> to vector<16x8xbf16>
    %cst_94 = arith.constant dense<0.000000e+00> : vector<16x4xf32>
    %259 = tpu.matmul %257, %255, %cst_94 {dimension_numbers = #tpu.dot_dimension_numbers<[1], [0], [0], [1], [0, 0, 1, 1], [], []>} : vector<16x8xf32>, vector<8x4xf32>, vector<16x4xf32> -> vector<16x4xf32>
    %cst_95 = arith.constant dense<0.000000e+00> : vector<4x16xf32>
    %260 = tpu.matmul %254, %257, %cst_95 {dimension_numbers = #tpu.dot_dimension_numbers<[0], [1], [1], [0], [0, 1, 1, 0], [], []>} : vector<8x4xf32>, vector<16x8xf32>, vector<4x16xf32> -> vector<4x16xf32>
    %261 = vector.extract_strided_slice %259 {offsets = [0, 0], sizes = [16, 1], strides = [1, 1]} : vector<16x4xf32> to vector<16x1xf32>
    %262 = vector.extract_strided_slice %260 {offsets = [0, 0], sizes = [1, 16], strides = [1, 1]} : vector<4x16xf32> to vector<1x16xf32>
    %263 = vector.broadcast %261 : vector<16x1xf32> to vector<16x16xf32>
    %264 = vector.broadcast %262 : vector<1x16xf32> to vector<16x16xf32>
    %265 = arith.addf %263, %264 : vector<16x16xf32>
    %cst_96 = arith.constant 0.000000e+00 : f32
    %266 = vector.broadcast %cst_96 : f32 to vector<16x16xf32>
    %267 = arith.cmpf ogt, %265, %266 : vector<16x16xf32>
    %cst_97 = arith.constant 2.000000e-01 : f32
    %268 = vector.broadcast %cst_97 : f32 to vector<16x16xf32>
    %269 = arith.mulf %268, %265 : vector<16x16xf32>
    %270 = arith.select %267, %265, %269 : vector<16x16xi1>, vector<16x16xf32>
    %cst_98 = arith.constant -1.000000e+30 : f32
    %271 = vector.broadcast %cst_98 : f32 to vector<16x16xf32>
    %272 = arith.select %3, %270, %271 : vector<16x16xi1>, vector<16x16xf32>
    %cst_99 = arith.constant dense<0xFF800000> : vector<16xf32>
    %273 = vector.multi_reduction <maximumf>, %272, %cst_99 [1] : vector<16x16xf32> to vector<16xf32>
    %274 = vector.shape_cast %273 : vector<16xf32> to vector<16x1xf32>
    %275 = vector.broadcast %274 : vector<16x1xf32> to vector<16x16xf32>
    %276 = arith.subf %272, %275 : vector<16x16xf32>
    %277 = math.exp %276 : vector<16x16xf32>
    %cst_100 = arith.constant dense<0.000000e+00> : vector<16xf32>
    %278 = vector.multi_reduction <add>, %277, %cst_100 [1] : vector<16x16xf32> to vector<16xf32>
    %279 = vector.shape_cast %278 : vector<16xf32> to vector<16x1xf32>
    %280 = arith.truncf %277 : vector<16x16xf32> to vector<16x16xbf16>
    %281 = vector.extract_strided_slice %258 {offsets = [0, 0], sizes = [16, 2], strides = [1, 1]} : vector<16x8xbf16> to vector<16x2xbf16>
    %cst_101 = arith.constant dense<0.000000e+00> : vector<16x2xf32>
    %282 = tpu.matmul %280, %281, %cst_101 {dimension_numbers = #tpu.dot_dimension_numbers<[1], [0], [0], [1], [0, 0, 1, 1], [], []>} : vector<16x16xbf16>, vector<16x2xbf16>, vector<16x2xf32> -> vector<16x2xf32>
    %283 = tpu.reciprocal %279 {approx = true} : vector<16x1xf32> -> vector<16x1xf32>
    %284 = vector.broadcast %283 : vector<16x1xf32> to vector<16x2xf32>
    %285 = arith.mulf %282, %284 : vector<16x2xf32>
    %286 = vector.extract_strided_slice %259 {offsets = [0, 1], sizes = [16, 1], strides = [1, 1]} : vector<16x4xf32> to vector<16x1xf32>
    %287 = vector.extract_strided_slice %260 {offsets = [1, 0], sizes = [1, 16], strides = [1, 1]} : vector<4x16xf32> to vector<1x16xf32>
    %288 = vector.broadcast %286 : vector<16x1xf32> to vector<16x16xf32>
    %289 = vector.broadcast %287 : vector<1x16xf32> to vector<16x16xf32>
    %290 = arith.addf %288, %289 : vector<16x16xf32>
    %cst_102 = arith.constant 0.000000e+00 : f32
    %291 = vector.broadcast %cst_102 : f32 to vector<16x16xf32>
    %292 = arith.cmpf ogt, %290, %291 : vector<16x16xf32>
    %cst_103 = arith.constant 2.000000e-01 : f32
    %293 = vector.broadcast %cst_103 : f32 to vector<16x16xf32>
    %294 = arith.mulf %293, %290 : vector<16x16xf32>
    %295 = arith.select %292, %290, %294 : vector<16x16xi1>, vector<16x16xf32>
    %cst_104 = arith.constant -1.000000e+30 : f32
    %296 = vector.broadcast %cst_104 : f32 to vector<16x16xf32>
    %297 = arith.select %3, %295, %296 : vector<16x16xi1>, vector<16x16xf32>
    %cst_105 = arith.constant dense<0xFF800000> : vector<16xf32>
    %298 = vector.multi_reduction <maximumf>, %297, %cst_105 [1] : vector<16x16xf32> to vector<16xf32>
    %299 = vector.shape_cast %298 : vector<16xf32> to vector<16x1xf32>
    %300 = vector.broadcast %299 : vector<16x1xf32> to vector<16x16xf32>
    %301 = arith.subf %297, %300 : vector<16x16xf32>
    %302 = math.exp %301 : vector<16x16xf32>
    %cst_106 = arith.constant dense<0.000000e+00> : vector<16xf32>
    %303 = vector.multi_reduction <add>, %302, %cst_106 [1] : vector<16x16xf32> to vector<16xf32>
    %304 = vector.shape_cast %303 : vector<16xf32> to vector<16x1xf32>
    %305 = arith.truncf %302 : vector<16x16xf32> to vector<16x16xbf16>
    %306 = vector.extract_strided_slice %258 {offsets = [0, 2], sizes = [16, 2], strides = [1, 1]} : vector<16x8xbf16> to vector<16x2xbf16>
    %cst_107 = arith.constant dense<0.000000e+00> : vector<16x2xf32>
    %307 = tpu.matmul %305, %306, %cst_107 {dimension_numbers = #tpu.dot_dimension_numbers<[1], [0], [0], [1], [0, 0, 1, 1], [], []>} : vector<16x16xbf16>, vector<16x2xbf16>, vector<16x2xf32> -> vector<16x2xf32>
    %308 = tpu.reciprocal %304 {approx = true} : vector<16x1xf32> -> vector<16x1xf32>
    %309 = vector.broadcast %308 : vector<16x1xf32> to vector<16x2xf32>
    %310 = arith.mulf %307, %309 : vector<16x2xf32>
    %311 = vector.extract_strided_slice %259 {offsets = [0, 2], sizes = [16, 1], strides = [1, 1]} : vector<16x4xf32> to vector<16x1xf32>
    %312 = vector.extract_strided_slice %260 {offsets = [2, 0], sizes = [1, 16], strides = [1, 1]} : vector<4x16xf32> to vector<1x16xf32>
    %313 = vector.broadcast %311 : vector<16x1xf32> to vector<16x16xf32>
    %314 = vector.broadcast %312 : vector<1x16xf32> to vector<16x16xf32>
    %315 = arith.addf %313, %314 : vector<16x16xf32>
    %cst_108 = arith.constant 0.000000e+00 : f32
    %316 = vector.broadcast %cst_108 : f32 to vector<16x16xf32>
    %317 = arith.cmpf ogt, %315, %316 : vector<16x16xf32>
    %cst_109 = arith.constant 2.000000e-01 : f32
    %318 = vector.broadcast %cst_109 : f32 to vector<16x16xf32>
    %319 = arith.mulf %318, %315 : vector<16x16xf32>
    %320 = arith.select %317, %315, %319 : vector<16x16xi1>, vector<16x16xf32>
    %cst_110 = arith.constant -1.000000e+30 : f32
    %321 = vector.broadcast %cst_110 : f32 to vector<16x16xf32>
    %322 = arith.select %3, %320, %321 : vector<16x16xi1>, vector<16x16xf32>
    %cst_111 = arith.constant dense<0xFF800000> : vector<16xf32>
    %323 = vector.multi_reduction <maximumf>, %322, %cst_111 [1] : vector<16x16xf32> to vector<16xf32>
    %324 = vector.shape_cast %323 : vector<16xf32> to vector<16x1xf32>
    %325 = vector.broadcast %324 : vector<16x1xf32> to vector<16x16xf32>
    %326 = arith.subf %322, %325 : vector<16x16xf32>
    %327 = math.exp %326 : vector<16x16xf32>
    %cst_112 = arith.constant dense<0.000000e+00> : vector<16xf32>
    %328 = vector.multi_reduction <add>, %327, %cst_112 [1] : vector<16x16xf32> to vector<16xf32>
    %329 = vector.shape_cast %328 : vector<16xf32> to vector<16x1xf32>
    %330 = arith.truncf %327 : vector<16x16xf32> to vector<16x16xbf16>
    %331 = vector.extract_strided_slice %258 {offsets = [0, 4], sizes = [16, 2], strides = [1, 1]} : vector<16x8xbf16> to vector<16x2xbf16>
    %cst_113 = arith.constant dense<0.000000e+00> : vector<16x2xf32>
    %332 = tpu.matmul %330, %331, %cst_113 {dimension_numbers = #tpu.dot_dimension_numbers<[1], [0], [0], [1], [0, 0, 1, 1], [], []>} : vector<16x16xbf16>, vector<16x2xbf16>, vector<16x2xf32> -> vector<16x2xf32>
    %333 = tpu.reciprocal %329 {approx = true} : vector<16x1xf32> -> vector<16x1xf32>
    %334 = vector.broadcast %333 : vector<16x1xf32> to vector<16x2xf32>
    %335 = arith.mulf %332, %334 : vector<16x2xf32>
    %336 = vector.extract_strided_slice %259 {offsets = [0, 3], sizes = [16, 1], strides = [1, 1]} : vector<16x4xf32> to vector<16x1xf32>
    %337 = vector.extract_strided_slice %260 {offsets = [3, 0], sizes = [1, 16], strides = [1, 1]} : vector<4x16xf32> to vector<1x16xf32>
    %338 = vector.broadcast %336 : vector<16x1xf32> to vector<16x16xf32>
    %339 = vector.broadcast %337 : vector<1x16xf32> to vector<16x16xf32>
    %340 = arith.addf %338, %339 : vector<16x16xf32>
    %cst_114 = arith.constant 0.000000e+00 : f32
    %341 = vector.broadcast %cst_114 : f32 to vector<16x16xf32>
    %342 = arith.cmpf ogt, %340, %341 : vector<16x16xf32>
    %cst_115 = arith.constant 2.000000e-01 : f32
    %343 = vector.broadcast %cst_115 : f32 to vector<16x16xf32>
    %344 = arith.mulf %343, %340 : vector<16x16xf32>
    %345 = arith.select %342, %340, %344 : vector<16x16xi1>, vector<16x16xf32>
    %cst_116 = arith.constant -1.000000e+30 : f32
    %346 = vector.broadcast %cst_116 : f32 to vector<16x16xf32>
    %347 = arith.select %3, %345, %346 : vector<16x16xi1>, vector<16x16xf32>
    %cst_117 = arith.constant dense<0xFF800000> : vector<16xf32>
    %348 = vector.multi_reduction <maximumf>, %347, %cst_117 [1] : vector<16x16xf32> to vector<16xf32>
    %349 = vector.shape_cast %348 : vector<16xf32> to vector<16x1xf32>
    %350 = vector.broadcast %349 : vector<16x1xf32> to vector<16x16xf32>
    %351 = arith.subf %347, %350 : vector<16x16xf32>
    %352 = math.exp %351 : vector<16x16xf32>
    %cst_118 = arith.constant dense<0.000000e+00> : vector<16xf32>
    %353 = vector.multi_reduction <add>, %352, %cst_118 [1] : vector<16x16xf32> to vector<16xf32>
    %354 = vector.shape_cast %353 : vector<16xf32> to vector<16x1xf32>
    %355 = arith.truncf %352 : vector<16x16xf32> to vector<16x16xbf16>
    %356 = vector.extract_strided_slice %258 {offsets = [0, 6], sizes = [16, 2], strides = [1, 1]} : vector<16x8xbf16> to vector<16x2xbf16>
    %cst_119 = arith.constant dense<0.000000e+00> : vector<16x2xf32>
    %357 = tpu.matmul %355, %356, %cst_119 {dimension_numbers = #tpu.dot_dimension_numbers<[1], [0], [0], [1], [0, 0, 1, 1], [], []>} : vector<16x16xbf16>, vector<16x2xbf16>, vector<16x2xf32> -> vector<16x2xf32>
    %358 = tpu.reciprocal %354 {approx = true} : vector<16x1xf32> -> vector<16x1xf32>
    %359 = vector.broadcast %358 : vector<16x1xf32> to vector<16x2xf32>
    %360 = arith.mulf %357, %359 : vector<16x2xf32>
    %361 = arith.addf %285, %310 : vector<16x2xf32>
    %362 = arith.addf %361, %335 : vector<16x2xf32>
    %363 = arith.addf %362, %360 : vector<16x2xf32>
    %cst_120 = arith.constant 2.500000e-01 : f32
    %364 = vector.broadcast %cst_120 : f32 to vector<16x2xf32>
    %365 = arith.mulf %363, %364 : vector<16x2xf32>
    %366 = vector.broadcast %256 : vector<1x2xf32> to vector<16x2xf32>
    %367 = arith.addf %365, %366 : vector<16x2xf32>
    %c0_121 = arith.constant 0 : index
    %c0_122 = arith.constant 0 : index
    %368 = vector.load %arg19[%c0_121, %c0_122] : memref<16x2xf32, #tpu.memory_space<vmem>>, vector<16x2xf32>
    tpu.vector_store %arg19[%c0_121, %c0_122], %367 {strides = array<i32>} : memref<16x2xf32, #tpu.memory_space<vmem>>, vector<16x2xf32>,
    return
  }
  func.func @transform_0(%arg0: i32) -> (i32, i32) {
    %c0_i32 = arith.constant 0 : i32
    %c0_i32_0 = arith.constant 0 : i32
    %c0_i32_1 = arith.constant 0 : i32
    return %c0_i32, %c0_i32_0 : i32, i32
  }
  func.func @transform_1(%arg0: i32) -> (i32, i32) {
    %c0_i32 = arith.constant 0 : i32
    %c0_i32_0 = arith.constant 0 : i32
    %c0_i32_1 = arith.constant 0 : i32
    return %c0_i32, %c0_i32_0 : i32, i32
  }
  func.func @transform_2(%arg0: i32) -> (i32, i32) {
    %c0_i32 = arith.constant 0 : i32
    %c0_i32_0 = arith.constant 0 : i32
    %c0_i32_1 = arith.constant 0 : i32
    return %c0_i32, %c0_i32_0 : i32, i32
  }
  func.func @transform_3(%arg0: i32) -> (i32, i32) {
    %c0_i32 = arith.constant 0 : i32
    %c0_i32_0 = arith.constant 0 : i32
    %c0_i32_1 = arith.constant 0 : i32
    return %c0_i32, %c0_i32_0 : i32, i32
  }
  func.func @transform_4(%arg0: i32) -> (i32, i32) {
    %c0_i32 = arith.constant 0 : i32
    %c0_i32_0 = arith.constant 0 : i32
    %c0_i32_1 = arith.constant 0 : i32
    return %c0_i32, %c0_i32_0 : i32, i32
  }
  func.func @transform_5(%arg0: i32) -> (i32, i32) {
    %c0_i32 = arith.constant 0 : i32
    %c0_i32_0 = arith.constant 0 : i32
    %c0_i32_1 = arith.constant 0 : i32
    return %c0_i32, %c0_i32_0 : i32, i32
  }
  func.func @transform_6(%arg0: i32) -> (i32, i32) {
    %c0_i32 = arith.constant 0 : i32
    %c0_i32_0 = arith.constant 0 : i32
    %c0_i32_1 = arith.constant 0 : i32
    return %c0_i32, %c0_i32_0 : i32, i32
  }
  func.func @transform_7(%arg0: i32) -> (i32, i32) {
    %c0_i32 = arith.constant 0 : i32
    %c0_i32_0 = arith.constant 0 : i32
    %c0_i32_1 = arith.constant 0 : i32
    return %c0_i32, %c0_i32_0 : i32, i32
  }
  func.func @transform_8(%arg0: i32) -> (i32, i32) {
    %c0_i32 = arith.constant 0 : i32
    %c0_i32_0 = arith.constant 0 : i32
    %c0_i32_1 = arith.constant 0 : i32
    return %c0_i32, %c0_i32_0 : i32, i32
  }
  func.func @transform_9(%arg0: i32) -> (i32, i32) {
    %c0_i32 = arith.constant 0 : i32
    %c0_i32_0 = arith.constant 0 : i32
    %c0_i32_1 = arith.constant 0 : i32
    return %c0_i32, %c0_i32_0 : i32, i32
  }
  func.func @transform_10(%arg0: i32) -> (i32, i32) {
    %c0_i32 = arith.constant 0 : i32
    %c0_i32_0 = arith.constant 0 : i32
    %c0_i32_1 = arith.constant 0 : i32
    return %c0_i32, %c0_i32_0 : i32, i32
  }
  func.func @transform_11(%arg0: i32) -> (i32, i32) {
    %c0_i32 = arith.constant 0 : i32
    %c0_i32_0 = arith.constant 0 : i32
    %c0_i32_1 = arith.constant 0 : i32
    return %c0_i32, %c0_i32_0 : i32, i32
  }
  func.func @transform_12(%arg0: i32) -> (i32, i32) {
    %c0_i32 = arith.constant 0 : i32
    %c0_i32_0 = arith.constant 0 : i32
    %c0_i32_1 = arith.constant 0 : i32
    return %c0_i32, %c0_i32_0 : i32, i32
  }
  func.func @transform_13(%arg0: i32) -> (i32, i32) {
    %c0_i32 = arith.constant 0 : i32
    %c0_i32_0 = arith.constant 0 : i32
    %c0_i32_1 = arith.constant 0 : i32
    return %c0_i32, %c0_i32_0 : i32, i32
  }
  func.func @transform_14(%arg0: i32) -> (i32, i32) {
    %c0_i32 = arith.constant 0 : i32
    %c0_i32_0 = arith.constant 0 : i32
    %c0_i32_1 = arith.constant 0 : i32
    return %c0_i32, %c0_i32_0 : i32, i32
  }
  func.func @transform_15(%arg0: i32) -> (i32, i32) {
    %c0_i32 = arith.constant 0 : i32
    %c0_i32_0 = arith.constant 0 : i32
    %c0_i32_1 = arith.constant 0 : i32
    return %c0_i32, %c0_i32_0 : i32, i32
  }
  func.func @transform_16(%arg0: i32) -> (i32, i32) {
    %c0_i32 = arith.constant 0 : i32
    %c0_i32_0 = arith.constant 0 : i32
    %c0_i32_1 = arith.constant 0 : i32
    return %c0_i32, %c0_i32_0 : i32, i32
  }
  func.func @transform_17(%arg0: i32) -> (i32, i32) {
    %c0_i32 = arith.constant 0 : i32
    %c0_i32_0 = arith.constant 0 : i32
    %c0_i32_1 = arith.constant 0 : i32
    return %c0_i32, %c0_i32_0 : i32, i32
  }
  func.func @transform_18(%arg0: i32) -> (i32, i32) {
    %c0_i32 = arith.constant 0 : i32
    %c0_i32_0 = arith.constant 0 : i32
    %c0_i32_1 = arith.constant 0 : i32
    return %c0_i32, %c0_i32_0 : i32, i32
  }
}

</mosaic_0001>

<bundles_post_ra>
// kernel: tpu_custom_call.1
= control target key start
LH: loop header
LB: loop body
LE: loop exit
PB: predicated region body
PF: predicated region fallthrough
CT: control target
= control target key end

     0   :  { %vm91_vm0 = vcmask 1043456   ;;  %v2513_v0 = vmov 0.0   ;;  %vm2514_vm1 = vmmov 0   ;;  %vm87_vm2 = vcmask 64512   ;;  %s2523_s23 = smov 8   ;;  %s2524_s24 = smov 16   ;;  %s3045_s2 = inlined_call_operand.vmem [shape: bf16[8,32], index: 2, kind: input, shape index: {}]   ;;  %s3046_s0 = inlined_call_operand.vmem [shape: bf16[16,8], index: 0, kind: input, shape index: {}]   ;;  %s3047_s4 = inlined_call_operand.vmem [shape: f32[32,4], index: 4, kind: input, shape index: {}]   ;;  %s3048_s3 = inlined_call_operand.vmem [shape: f32[32,4], index: 3, kind: input, shape index: {}]   ;;  %s3049_s1 = inlined_call_operand.vmem [shape: s8[16,16], index: 1, kind: input, shape index: {}]   ;;  %s3050_s8 = inlined_call_operand.vmem [shape: bf16[32,32], index: 8, kind: input, shape index: {}]   ;;  %s3051_s10 = inlined_call_operand.vmem [shape: f32[32,4], index: 10, kind: input, shape index: {}]   ;;  %s3052_s9 = inlined_call_operand.vmem [shape: f32[32,4], index: 9, kind: input, shape index: {}]   ;;  %s3053_s5 = inlined_call_operand.vmem [shape: f32[1,32], index: 5, kind: input, shape index: {}]   ;;  %s3054_s6 = inlined_call_operand.vmem [shape: f32[1,32], index: 6, kind: input, shape index: {}]   ;;  %s3055_s7 = inlined_call_operand.vmem [shape: f32[1,32], index: 7, kind: input, shape index: {}]   ;;  %s3056_s14 = inlined_call_operand.vmem [shape: bf16[32,8], index: 14, kind: input, shape index: {}]   ;;  %s3057_s16 = inlined_call_operand.vmem [shape: f32[8,4], index: 16, kind: input, shape index: {}]   ;;  %s3058_s15 = inlined_call_operand.vmem [shape: f32[8,4], index: 15, kind: input, shape index: {}]   ;;  %s3059_s11 = inlined_call_operand.vmem [shape: f32[1,32], index: 11, kind: input, shape index: {}]   ;;  %s3060_s12 = inlined_call_operand.vmem [shape: f32[1,32], index: 12, kind: input, shape index: {}]   ;;  %s3061_s13 = inlined_call_operand.vmem [shape: f32[1,32], index: 13, kind: input, shape index: {}]   ;;  %s3062_s17 = inlined_call_operand.vmem [shape: f32[1,2], index: 17, kind: input, shape index: {}]   ;;  %s3063_s18 = inlined_call_operand.vmem [shape: f32[16,2], index: 18, kind: output, shape index: {}]  }
   0x1   :  { %3065 = sst [smem:[#allocation2_spill]] %s3045_s2  ;;  %2197 = vmatprep.subr.bf16.mxu0 %v2513_v0  ;;  %2199 = vmatprep.mubr.msk.bf16.mxu0 %vm2514_vm1, %v2513_v0  ;;  %v71_v9 = vld [vmem:[%s3048_s3] sm:$0xff]  ;;  %v72_v11 = vld [vmem:[%s3048_s3 + $0x8] sm:$0xff]  ;;  %v2515_v12 = vmov 0.0|0.0   ;;  %v73_v13 = vld [vmem:[%s3048_s3 + $0x10] sm:$0xff]  ;;  %v2516_v15 = vmov 0   ;;  %v334_v30 = vlaneseq }
   0x2   :  { %3066 = sst [smem:[#allocation3_spill]] %s3046_s0  ;;  %s3068_s29 = sld [smem:[#allocation2_spill]]  ;;  %219 = vxpose.xlu0.b32.start [1/4] (short) (narrow) %v71_v9, 8  ;;  %v74_v14 = vld [vmem:[%s3048_s3 + $0x18] sm:$0xff]  ;;  %2383 = vset.pattern.permute.xlu1 %v2516_v15  ;;  %vm137_vm3 = vcmask 261120   ;;  %v2517_v23 = vmov 2  }
   0x3   :  { %3067 = sst [smem:[#allocation4_spill]] %s3047_s4  ;;  %s3069_s19 = sld [smem:[#allocation3_spill]]  ;;  %vm2666_vm4 = vmpackc.low %vm137_vm3, %vm137_vm3  ;;  %v2518_v26 = vmov 1   ;;  %v2519_v29 = vmov 3   ;;  %v335_v31 = vshrl.u32 %v334_v30, 7  ;;  %vm348_vm7 = vcmask 130048  }
   0x4   :  { %s3070_s21 = sld [smem:[#allocation4_spill]]  ;;  %s2520_s3 = smov 112   ;;  %v2138_v32 = vld [vmem:[%s3049_s1] sm:$0xf]  }
   0x5   :  { %v2696_v33 = vsub.s32 0, %v335_v31  ;;  %v2140_v34 = vunpack.c.1.s8 %v2138_v32  ;;  %v2699_v36 = vsub.s32 1, %v335_v31  ;;  %v2717_v52 = vsub.s32 2, %v335_v31  ;;  %s2521_s1 = smov 120   ;;  %s2522_s4 = smov 104  }
   0x6   :  { %220 = vxpose.xlu0.b32.cont [2/4] (short) (narrow) %v72_v11, 8  ;;  %v2720_v58 = vsub.s32 3, %v335_v31  ;;  %s2525_s25 = smov 24   ;;  %s2528_s27 = smov 122  }
   0x7   :  { %v2701_v37 = vcvt.s32.f32 %v2140_v34 }
   0x8   :  { %v70_v1 = vld [vmem:[%s3068_s29] sm:$0xf] }
   0x9   :  { %v93_v2 = vsel %vm91_vm0, %v70_v1, 0  ;;  %v2404_v3 = vld [vmem:[%s3069_s19] sm:$0xff]   ;;  %vm67_vm5 = vcmp.gt.f32.partialorder %v2701_v37, 0.0  ;;  %vm721_vm0 = vcmask 195584  }
   0xa   :  { %v75_v4 = vld [vmem:[%s3070_s21] sm:$0xff]  ;;  %v76_v5 = vld [vmem:[%s3070_s21 + $0x8] sm:$0xff]  ;;  %2198 = vmatpush3.bf16.msra.mxu0 %v93_v2  ;;  %v77_v7 = vld [vmem:[%s3070_s21 + $0x10] sm:$0xff]  ;;  %221 = vxpose.xlu0.b32.cont [3/4] (short) (narrow) %v73_v13, 8  ;;  %v2139_v2 = vunpack.c.0.s8 %v2138_v32 }
   0xb   :  { %v2339_v6 = vpack.c.bf16 %v76_v5, %v75_v4  ;;  %v78_v8 = vld [vmem:[%s3070_s21 + $0x18] sm:$0xff]  ;;  %2347 = vmatprep.subr.bf16.mxu0 %v2515_v12 }
   0xc   :  { %v2343_v10 = vpack.c.bf16 %v78_v8, %v77_v7  ;;  %v2728_v9 = vcvt.s32.f32 %v2139_v2 }
   0xd   :  { %2340 = vmatprep.subr.bf16.mxu1 %v2339_v6  ;;  %2200 = vmatmul.mubr.msk.bf16.vlgmr.msra.gmra.mrb[0].mxu0 %vm87_vm2, %v2404_v3 }
   0xe   :  { %2342 = vmatpush3.bf16.msra.mxu1 %v2339_v6  ;;  %2218 = vmatprep.mubr.msk.f32.mxu0 %vm2514_vm1, %v2513_v0  ;;  %vm66_vm13 = vcmp.gt.f32.partialorder %v2728_v9, 0.0 }
   0xf   :  { %2344 = vmatprep.subr.bf16.mxu1 %v2343_v10  ;;  %222 = vxpose.xlu0.b32.end [4/4] (short) (narrow) %v74_v14, 8 }
  0x12   :  { %2346 = vmatpush3.bf16.msra.mxu1 %v2343_v10 }
  0x13   :  { %2221 = vmatprep.subr.bf16.mxu1 %v2513_v0 }
  0x38   :  { %2387 = vset.pattern.permute.xlu0 %v2517_v23 }
  0x83   :  { %v235_v22 = vpop.trf.xlu0 }
  0xe0   :  { %v129_v16 = vpop.f32.mrb[0].mxu0 }
  0xe1   :  { %v2201_v17 = vpop.f32.mrb[1].mxu0  ;;  %2211 = vmatprep.mubr.msk.f32.mxu1 %vm137_vm3, %v129_v16 }
  0xe2   :  { %v132_v18 = vpop.f32.mrb[2].mxu0 }
  0xe3   :  { %v2670_v20 = vpack.c.bf16 %v132_v18, %v129_v16  ;;  %v2202_v21 = vpop.f32.mrb[3].mxu0  ;;  %2212 = vmatmul.mubr.msk.f32.vlgmr.msra.gmra.mrb[0].mxu1 %vm137_vm3, %v132_v18 }
  0xe4   :  { %2223 = vmatprep.mubr.msk.bf16.mxu1 %vm2514_vm1, %v2513_v0 }
  0xe5   :  { %2350 = vmatpush3.bf16.xpose.msk.msra.mxu0 %vm2666_vm4, %v2670_v20  ;;  %2222 = vmatpush3.bf16.msra.mxu1 %v2670_v20 }
  0xe6   :  { %2227 = vmatprep.subr.bf16.mxu0 %v2513_v0  ;;  %2233 = vmatprep.subr.bf16.mxu1 %v2513_v0 }
  0xec   :  { %2219 = vmatmul.mubr.msk.f32.vlgmr.msra.gmra.mrb[4].mxu0 %vm137_vm3, %v235_v22 }
  0xed   :  { %2229 = vmatprep.mubr.msk.bf16.mxu0 %vm2514_vm1, %v2513_v0 }
 0x1b6   :  { %v2213_v24 = vpop.f32.mrb[0].mxu1 }
 0x1b7   :  { %331 = vperm.xlu1 %2383, %v2213_v24   ;;  %v210_v25 = vpop.f32.mrb[1].mxu1 }
 0x1b8   :  { %510 = vperm.xlu0 %2387, %v210_v25  }
 0x1bb   :  { %2384 = vset.pattern.permute.xlu1 %v2518_v26 }
 0x1bc   :  { %421 = vperm.xlu1 %2384, %v2213_v24   ;;  %2390 = vset.pattern.permute.xlu0 %v2516_v15 }
 0x1bf   :  { %v320_v27 = vpop.f32.mrb[4].mxu0 }
 0x1c0   :  { %2385 = vset.pattern.permute.xlu1 %v2516_v15  ;;  %v2220_v28 = vpop.f32.mrb[5].mxu0  ;;  %v337_v35 = vrot.slane %v320_v27, %v2696_v33  ;;  %v427_v40 = vrot.slane %v320_v27, %v2699_v36  ;;  %v520_v54 = vrot.slane %v320_v27, %v2717_v52  ;;  %v612_v1 = vrot.slane %v320_v27, %v2720_v58 }
 0x1c1   :  { %326 = vperm.xlu1 %2385, %v210_v25  }
 0x1c5   :  { %2386 = vset.pattern.permute.xlu1 %v2518_v26 }
 0x1c6   :  { %417 = vperm.xlu1 %2386, %v210_v25  }
 0x1ca   :  { %2388 = vset.pattern.permute.xlu1 %v2517_v23 }
 0x1cb   :  { %514 = vperm.xlu1 %2388, %v2213_v24  }
 0x1cf   :  { %2389 = vset.pattern.permute.xlu1 %v2519_v29 }
 0x1d0   :  { %602 = vperm.xlu1 %2389, %v210_v25  }
 0x1d4   :  { %606 = vperm.xlu1 %2389, %v2213_v24  }
 0x1d8   :  { %550 = vrot.lane.b32.xlu1 %v2670_v20, %s2520_s3 }
 0x236   :  { %v332_v38 = vpop.permute.xlu1 %331 }
 0x237   :  { %v339_v39 = vadd.f32 %v337_v35, %v332_v38  ;;  %v511_v7 = vpop.permute.xlu0 %510 }
 0x238   :  { %v521_v10 = vadd.f32 %v520_v54, %v511_v7 }
 0x239   :  { %v343_v41 = vmul.f32 0.2, %v339_v39  ;;  %vm341_vm6 = vcmp.gt.f32.partialorder %v339_v39, 0.0 }
 0x23a   :  { %v525_v21 = vmul.f32 0.2, %v521_v10  ;;  %vm523_vm14 = vcmp.gt.f32.partialorder %v521_v10, 0.0 }
 0x23b   :  { %v422_v42 = vpop.permute.xlu1 %421  ;;  %v345_v43 = vsel %vm341_vm6, %v339_v39, %v343_v41 }
 0x23c   :  { %v429_v44 = vadd.f32 %v427_v40, %v422_v42  ;;  %v2707_v45 = vsel %vm67_vm5, %v345_v43, -1e+30  ;;  %v527_v30 = vsel %vm523_vm14, %v521_v10, %v525_v21 }
 0x23d   :  { %v352_v46 = vsel %vm348_vm7, %v2707_v45, -inf  ;;  %v529_v32 = vsel %vm66_vm13, %v527_v30, -1e+30 }
 0x23e   :  { %v433_v47 = vmul.f32 0.2, %v429_v44  ;;  %353 = vmax.xlane.f32.xlu0 %v352_v46  ;;  %vm431_vm8 = vcmp.gt.f32.partialorder %v429_v44, 0.0 }
 0x240   :  { %v327_v48 = vpop.permute.xlu1 %326  ;;  %v435_v49 = vsel %vm431_vm8, %v429_v44, %v433_v47 }
 0x241   :  { %v2713_v50 = vsel %vm67_vm5, %v435_v49, -1e+30  ;;  %v338_v61 = vadd.f32 %v337_v35, %v327_v48  ;;  %v531_v35 = vsel %vm348_vm7, %v529_v32, -inf }
 0x242   :  { %v441_v51 = vsel %vm348_vm7, %v2713_v50, -inf }
 0x243   :  { %442 = vmax.xlane.f32.xlu1 %v441_v51  ;;  %v342_v4 = vmul.f32 0.2, %v338_v61  ;;  %vm340_vm10 = vcmp.gt.f32.partialorder %v338_v61, 0.0 }
 0x245   :  { %v418_v53 = vpop.permute.xlu1 %417  ;;  %v344_v14 = vsel %vm340_vm10, %v338_v61, %v342_v4 }
 0x246   :  { %v428_v5 = vadd.f32 %v427_v40, %v418_v53  ;;  %v346_v18 = vsel %vm66_vm13, %v344_v14, -1e+30 }
 0x247   :  { %v349_v25 = vsel %vm348_vm7, %v346_v18, -inf }
 0x248   :  { %v432_v11 = vmul.f32 0.2, %v428_v5  ;;  %vm430_vm12 = vcmp.gt.f32.partialorder %v428_v5, 0.0 }
 0x24a   :  { %v515_v55 = vpop.permute.xlu1 %514  ;;  %v434_v24 = vsel %vm430_vm12, %v428_v5, %v432_v11 }
 0x24b   :  { %v522_v56 = vadd.f32 %v520_v54, %v515_v55  ;;  %v436_v27 = vsel %vm66_vm13, %v434_v24, -1e+30 }
 0x24c   :  { %v438_v31 = vsel %vm348_vm7, %v436_v27, -inf }
 0x24d   :  { %v526_v57 = vmul.f32 0.2, %v522_v56  ;;  %vm524_vm9 = vcmp.gt.f32.partialorder %v522_v56, 0.0 }
 0x24f   :  { %v603_v59 = vpop.permute.xlu1 %602  ;;  %v528_v60 = vsel %vm524_vm9, %v522_v56, %v526_v57 }
 0x250   :  { %v530_v62 = vsel %vm67_vm5, %v528_v60, -1e+30  ;;  %v613_v22 = vadd.f32 %v612_v1, %v603_v59 }
 0x251   :  { %v534_v63 = vsel %vm348_vm7, %v530_v62, -inf }
 0x252   :  { %535 = vmax.xlane.f32.xlu1 %v534_v63  ;;  %v617_v28 = vmul.f32 0.2, %v613_v22  ;;  %vm615_vm15 = vcmp.gt.f32.partialorder %v613_v22, 0.0 }
 0x253   :  { %v607_v3 = vpop.permute.xlu1 %606 }
 0x254   :  { %v614_v6 = vadd.f32 %v612_v1, %v607_v3  ;;  %458 = vrot.lane.b32.xlu0 %v2670_v20, %s2521_s1  ;;  %v619_v34 = vsel %vm615_vm15, %v613_v22, %v617_v28 }
 0x255   :  { %v621_v38 = vsel %vm66_vm13, %v619_v34, -1e+30 }
 0x256   :  { %v618_v8 = vmul.f32 0.2, %v614_v6  ;;  %vm616_vm11 = vcmp.gt.f32.partialorder %v614_v6, 0.0  ;;  %v623_v39 = vsel %vm348_vm7, %v621_v38, -inf }
 0x257   :  { %v551_v41 = vpop.permute.xlu1 %550 }
 0x258   :  { %v620_v13 = vsel %vm616_vm11, %v614_v6, %v618_v8 }
 0x259   :  { %v622_v16 = vsel %vm67_vm5, %v620_v13, -1e+30 }
 0x25a   :  { %v626_v17 = vsel %vm348_vm7, %v622_v16, -inf }
 0x25b   :  { %627 = vmax.xlane.f32.xlu1 %v626_v17 }
 0x25f   :  { %350 = vmax.xlane.f32.xlu1 %v349_v25 }
 0x263   :  { %439 = vmax.xlane.f32.xlu1 %v438_v31 }
 0x267   :  { %532 = vmax.xlane.f32.xlu1 %v531_v35 }
 0x26b   :  { %624 = vmax.xlane.f32.xlu1 %v623_v39 }
 0x27c   :  { %642 = vrot.lane.b32.xlu1 %v2670_v20, %s2522_s4 }
 0x2cb   :  { %v354_v40 = vpop.xlane.xlu0 %353 }
 0x2cc   :  { %v356_v20 = vsub.f32 %v2707_v45, %v354_v40 }
 0x2ce   :  { %v359_v55 = vmul.f32 1.442695, %v356_v20 }
 0x2cf   :  { %v459_v42 = vpop.permute.xlu0 %458 }
 0x2d0   :  { %v443_v43 = vpop.xlane.xlu1 %442  ;;  %2228 = vmatpush3.bf16.msra.mxu0 %v459_v42 }
 0x2d1   :  { %v445_v44 = vsub.f32 %v2713_v50, %v443_v43  ;;  %2239 = vmatprep.subr.bf16.mxu0 %v2513_v0 }
 0x2d3   :  { %v448_v46 = vmul.f32 1.442695, %v445_v44 }
 0x2d5   :  { %2409 = vpow2.f32 %v448_v46 }
 0x2df   :  { %v2410_v47 = vpop.eup %2409  ;;  %v536_v48 = vpop.xlane.xlu1 %535 }
 0x2e0   :  { %v538_v49 = vsub.f32 %v530_v62, %v536_v48  ;;  %v453_v51 = vsel %vm348_vm7, %v2410_v47, 0.0 }
 0x2e1   :  { %454 = vadd.xlane.f32.xlu0 %v453_v51 }
 0x2e2   :  { %v541_v53 = vmul.f32 1.442695, %v538_v49 }
 0x2e4   :  { %2411 = vpow2.f32 %v541_v53 }
 0x2e5   :  { %2413 = vpow2.f32 %v359_v55 }
 0x2e8   :  { %v628_v54 = vpop.xlane.xlu1 %627 }
 0x2e9   :  { %v630_v63 = vsub.f32 %v622_v16, %v628_v54 }
 0x2eb   :  { %v633_v4 = vmul.f32 1.442695, %v630_v63 }
 0x2ec   :  { %v351_v56 = vpop.xlane.xlu1 %350 }
 0x2ed   :  { %v355_v57 = vsub.f32 %v346_v18, %v351_v56 }
 0x2ee   :  { %v2412_v59 = vpop.eup %2411 }
 0x2ef   :  { %v357_v50 = vmul.f32 1.442695, %v355_v57  ;;  %v546_v60 = vsel %vm348_vm7, %v2412_v59, 0.0  ;;  %v2414_v7 = vpop.eup %2413 }
 0x2f0   :  { %547 = vadd.xlane.f32.xlu0 %v546_v60  ;;  %v440_v61 = vpop.xlane.xlu1 %439  ;;  %v364_v31 = vsel %vm348_vm7, %v2414_v7, 0.0 }
 0x2f1   :  { %2415 = vpow2.f32 %v357_v50  ;;  %v444_v62 = vsub.f32 %v436_v27, %v440_v61 }
 0x2f3   :  { %v446_v1 = vmul.f32 1.442695, %v444_v62 }
 0x2f4   :  { %v533_v2 = vpop.xlane.xlu1 %532 }
 0x2f5   :  { %2417 = vpow2.f32 %v446_v1  ;;  %v537_v3 = vsub.f32 %v529_v32, %v533_v2 }
 0x2f7   :  { %v539_v45 = vmul.f32 1.442695, %v537_v3 }
 0x2f8   :  { %v625_v5 = vpop.xlane.xlu1 %624 }
 0x2f9   :  { %2419 = vpow2.f32 %v539_v45  ;;  %v629_v6 = vsub.f32 %v621_v38, %v625_v5 }
 0x2fa   :  { %2421 = vpow2.f32 %v633_v4 }
 0x2fb   :  { %v2416_v8 = vpop.eup %2415  ;;  %v631_v10 = vmul.f32 1.442695, %v629_v6 }
 0x2fc   :  { %v367_v11 = vpack.c.bf16 %v2414_v7, %v2416_v8  ;;  %v643_v17 = vpop.permute.xlu1 %642  ;;  %v361_v32 = vsel %vm348_vm7, %v2416_v8, 0.0  ;;  %v2405_v8 = vld [vmem:[%s3050_s8] sm:$0xff]  }
 0x2fd   :  { %2423 = vpow2.f32 %v631_v10  ;;  %v2406_v10 = vld [vmem:[%s3050_s8 + $0x8] sm:$0xff]  }
 0x2fe   :  { %2224 = vmatmul.mubr.msk.bf16.vlgmr.msra.gmra.mrb[4].mxu1 %vm348_vm7, %v367_v11  ;;  %v767_v11 = vld [vmem:[%s3051_s10] sm:$0xff] }
 0x2ff   :  { %v2418_v13 = vpop.eup %2417  ;;  %2234 = vmatpush3.bf16.msra.mxu1 %v551_v41  ;;  %2235 = vmatprep.mubr.msk.bf16.mxu1 %vm2514_vm1, %v2513_v0 }
 0x300   :  { %v450_v14 = vsel %vm348_vm7, %v2418_v13, 0.0  ;;  %v456_v16 = vpack.c.bf16 %v2410_v47, %v2418_v13  ;;  %2245 = vmatprep.subr.bf16.mxu1 %v2513_v0  ;;  %v768_v13 = vld [vmem:[%s3051_s10 + $0x8] sm:$0xff] }
 0x301   :  { %451 = vadd.xlane.f32.xlu1 %v450_v14  ;;  %v2351_v14 = vpack.c.bf16 %v768_v13, %v767_v11 }
 0x302   :  { %2230 = vmatmul.mubr.msk.bf16.vlgmr.msra.gmra.mrb[8].mxu0 %vm348_vm7, %v456_v16  ;;  %v769_v16 = vld [vmem:[%s3051_s10 + $0x10] sm:$0xff] }
 0x303   :  { %v2420_v18 = vpop.eup %2419  ;;  %2240 = vmatpush3.bf16.msra.mxu0 %v643_v17  ;;  %2241 = vmatprep.mubr.msk.bf16.mxu0 %vm2514_vm1, %v2513_v0  ;;  %v770_v17 = vld [vmem:[%s3051_s10 + $0x18] sm:$0xff] }
 0x304   :  { %v543_v21 = vsel %vm348_vm7, %v2420_v18, 0.0  ;;  %v549_v22 = vpack.c.bf16 %v2412_v59, %v2420_v18  ;;  %v2422_v24 = vpop.eup %2421  ;;  %v2355_v18 = vpack.c.bf16 %v770_v17, %v769_v16  ;;  %2352 = vmatprep.subr.bf16.mxu0 %v2351_v14 }
 0x305   :  { %544 = vadd.xlane.f32.xlu0 %v543_v21  ;;  %v638_v27 = vsel %vm348_vm7, %v2422_v24, 0.0  ;;  %v763_v21 = vld [vmem:[%s3052_s9] sm:$0xff] }
 0x306   :  { %2236 = vmatmul.mubr.msk.bf16.vlgmr.msra.gmra.mrb[8].mxu1 %vm348_vm7, %v549_v22  ;;  %v764_v22 = vld [vmem:[%s3052_s9 + $0x8] sm:$0xff] }
 0x307   :  { %v2424_v25 = vpop.eup %2423  ;;  %2249 = vmatprep.mubr.msk.bf16.mxu1 %vm2514_vm1, %v2513_v0  ;;  %2246 = vmatpush3.bf16.msra.mxu1 %v2405_v8 }
 0x308   :  { %v635_v28 = vsel %vm348_vm7, %v2424_v25, 0.0  ;;  %v641_v30 = vpack.c.bf16 %v2422_v24, %v2424_v25  ;;  %2247 = vmatprep.subr.bf16.mxu1 %v2513_v0  ;;  %v765_v24 = vld [vmem:[%s3052_s9 + $0x10] sm:$0xff]  ;;  %v766_v25 = vld [vmem:[%s3052_s9 + $0x18] sm:$0xff] }
 0x309   :  { %639 = vadd.xlane.f32.xlu0 %v638_v27  ;;  %636 = vadd.xlane.f32.xlu1 %v635_v28 }
 0x30a   :  { %2242 = vmatmul.mubr.msk.bf16.vlgmr.msra.gmra.mrb[12].mxu0 %vm348_vm7, %v641_v30 }
 0x30b   :  { %2248 = vmatpush3.bf16.msra.mxu1 %v2406_v10  ;;  %2354 = vmatpush3.bf16.msra.mxu0 %v2351_v14 }
 0x30c   :  { %2359 = vmatprep.subr.bf16.mxu1 %v2515_v12  ;;  %2356 = vmatprep.subr.bf16.mxu0 %v2355_v18 }
 0x30d   :  { %365 = vadd.xlane.f32.xlu0 %v364_v31  ;;  %362 = vadd.xlane.f32.xlu1 %v361_v32 }
 0x30f   :  { %2358 = vmatpush3.bf16.msra.mxu0 %v2355_v18 }
 0x310   :  { %2271 = vmatprep.subr.bf16.mxu0 %v2513_v0 }
 0x36e   :  { %v455_v34 = vpop.xlane.xlu0 %454 }
 0x37d   :  { %v548_v35 = vpop.xlane.xlu0 %547 }
 0x38e   :  { %v452_v38 = vpop.xlane.xlu1 %451 }
 0x38f   :  { %2425 = vrcp.f32 %v452_v38 }
 0x390   :  { %2427 = vrcp.f32 %v455_v34 }
 0x392   :  { %v545_v39 = vpop.xlane.xlu0 %544 }
 0x393   :  { %2429 = vrcp.f32 %v545_v39 }
 0x394   :  { %2431 = vrcp.f32 %v548_v35 }
 0x396   :  { %v640_v41 = vpop.xlane.xlu0 %639  ;;  %v637_v44 = vpop.xlane.xlu1 %636 }
 0x397   :  { %2433 = vrcp.f32 %v640_v41 }
 0x398   :  { %2435 = vrcp.f32 %v637_v44 }
 0x399   :  { %v2426_v47 = vpop.eup %2425 }
 0x39a   :  { %v2428_v53 = vpop.eup %2427  ;;  %v366_v27 = vpop.xlane.xlu0 %365 }
 0x39b   :  { %2437 = vrcp.f32 %v366_v27  ;;  %v363_v28 = vpop.xlane.xlu1 %362 }
 0x39c   :  { %2439 = vrcp.f32 %v363_v28 }
 0x39d   :  { %v2430_v56 = vpop.eup %2429 }
 0x39e   :  { %v2432_v62 = vpop.eup %2431 }
 0x3a1   :  { %v2434_v3 = vpop.eup %2433 }
 0x3a2   :  { %v2436_v6 = vpop.eup %2435 }
 0x3a5   :  { %v2438_v32 = vpop.eup %2437 }
 0x3a6   :  { %v2440_v38 = vpop.eup %2439 }
 0x3d1   :  { %v2770_v40 = vpop.f32.mrb[4].mxu1 }
 0x3d2   :  { %v2225_v42 = vpop.f32.mrb[5].mxu1 }
 0x3d3   :  { %v2772_v43 = vpop.f32.mrb[6].mxu1  ;;  %v414_v42 = vmul.f32 %v2440_v38, %v2770_v40 }
 0x3d4   :  { %v2226_v46 = vpop.f32.mrb[7].mxu1  ;;  %v415_v35 = vmul.f32 %v2438_v32, %v2772_v43 }
 0x3d5   :  { %v498_v48 = vpop.f32.mrb[8].mxu0  ;;  %v2102_v46 = vld [vmem:[%s3053_s5] ss:$0 sm:$0xff] }
 0x3d6   :  { %v507_v49 = vmul.f32 %v2426_v47, %v498_v48  ;;  %v2231_v51 = vpop.f32.mrb[9].mxu0 }
 0x3d7   :  { %v501_v20 = vpop.f32.mrb[10].mxu0 }
 0x3d8   :  { %v508_v54 = vmul.f32 %v2428_v53, %v501_v20  ;;  %695 = vrot.lane.b32.xlu1 %v507_v49, %s2523_s23  ;;  %v2232_v55 = vpop.f32.mrb[11].mxu0 }
 0x3d9   :  { %v590_v57 = vpop.f32.mrb[8].mxu1 }
 0x3da   :  { %v599_v59 = vmul.f32 %v2430_v56, %v590_v57  ;;  %v2237_v50 = vpop.f32.mrb[9].mxu1  ;;  %697 = vrot.lane.b32.xlu0 %v508_v54, %s2523_s23  ;;  %v2105_v57 = vld [vmem:[%s3054_s6] ss:$0 sm:$0xff] }
 0x3db   :  { %v593_v60 = vpop.f32.mrb[10].mxu1 }
 0x3dc   :  { %v2238_v61 = vpop.f32.mrb[11].mxu1  ;;  %703 = vrot.lane.b32.xlu1 %v599_v59, %s2524_s24  ;;  %v600_v1 = vmul.f32 %v2432_v62, %v593_v60 }
 0x3dd   :  { %v682_v63 = vpop.f32.mrb[12].mxu0 }
 0x3de   :  { %v2243_v2 = vpop.f32.mrb[13].mxu0  ;;  %v691_v7 = vmul.f32 %v2436_v6, %v682_v63  ;;  %v2106_v63 = vld [vmem:[%s3055_s7] ss:$0 sm:$0xff] }
 0x3df   :  { %v685_v4 = vpop.f32.mrb[14].mxu0 }
 0x3e0   :  { %v692_v45 = vmul.f32 %v2434_v3, %v685_v4  ;;  %705 = vrot.lane.b32.xlu1 %v600_v1, %s2524_s24  ;;  %v2244_v5 = vpop.f32.mrb[15].mxu0 }
 0x3e2   :  { %713 = vrot.lane.b32.xlu0 %v692_v45, %s2525_s25 }
 0x3e4   :  { %711 = vrot.lane.b32.xlu1 %v691_v7, %s2525_s25 }
 0x40d   :  { %912 = vxpose.xlu1.b32.start [1/4] (short) (narrow) %v763_v21, 8 }
 0x411   :  { %913 = vxpose.xlu1.b32.cont [2/4] (short) (narrow) %v764_v22, 8 }
 0x415   :  { %914 = vxpose.xlu1.b32.cont [3/4] (short) (narrow) %v765_v24, 8 }
 0x419   :  { %915 = vxpose.xlu1.b32.end [4/4] (short) (narrow) %v766_v25, 8 }
 0x437   :  { %2397 = vset.pattern.permute.xlu1 %v2516_v15 }
 0x44a   :  { %v696_v30 = vpop.permute.xlu1 %695 }
 0x44b   :  { %v717_v48 = vsel %vm87_vm2, %v414_v42, %v696_v30 }
 0x44c   :  { %v698_v34 = vpop.permute.xlu0 %697 }
 0x44d   :  { %v718_v39 = vsel %vm87_vm2, %v415_v35, %v698_v34 }
 0x44e   :  { %v704_v31 = vpop.permute.xlu1 %703 }
 0x44f   :  { %v719_v43 = vsel %vm348_vm7, %v717_v48, %v704_v31 }
 0x452   :  { %v706_v41 = vpop.permute.xlu1 %705 }
 0x453   :  { %v720_v44 = vsel %vm348_vm7, %v718_v39, %v706_v41 }
 0x454   :  { %v714_v47 = vpop.permute.xlu0 %713 }
 0x455   :  { %v723_v49 = vsel %vm721_vm0, %v720_v44, %v714_v47 }
 0x456   :  { %v731_v51 = vadd.f32 %v2102_v46, %v723_v49  ;;  %v712_v53 = vpop.permute.xlu1 %711 }
 0x457   :  { %v722_v20 = vsel %vm721_vm0, %v719_v43, %v712_v53 }
 0x458   :  { %v736_v54 = vmul.f32 1.442695, %v731_v51  ;;  %v730_v55 = vadd.f32 %v2102_v46, %v722_v20  ;;  %vm733_vm6 = vcmp.gt.f32.partialorder %v731_v51, 0.0 }
 0x45a   :  { %2441 = vpow2.f32 %v736_v54  ;;  %v734_v40 = vmul.f32 1.442695, %v730_v55  ;;  %vm732_vm8 = vcmp.gt.f32.partialorder %v730_v55, 0.0 }
 0x45c   :  { %2443 = vpow2.f32 %v734_v40 }
 0x464   :  { %v2442_v56 = vpop.eup %2441 }
 0x465   :  { %v2104_v59 = vadd.f32 -1.0, %v2442_v56 }
 0x466   :  { %v2444_v50 = vpop.eup %2443 }
 0x467   :  { %v741_v60 = vsel %vm733_vm6, %v731_v51, %v2104_v59  ;;  %v2103_v61 = vadd.f32 -1.0, %v2444_v50 }
 0x468   :  { %v749_v62 = vmul.f32 %v2105_v57, %v741_v60 }
 0x469   :  { %v740_v1 = vsel %vm732_vm8, %v730_v55, %v2103_v61 }
 0x46a   :  { %v748_v2 = vmul.f32 %v2105_v57, %v740_v1  ;;  %v757_v3 = vadd.f32 %v2106_v63, %v749_v62 }
 0x46c   :  { %v756_v4 = vadd.f32 %v2106_v63, %v748_v2 }
 0x46e   :  { %v758_v45 = vpack.c.bf16 %v757_v3, %v756_v4 }
 0x470   :  { %2250 = vmatmul.mubr.msk.bf16.vlgmr.msra.gmra.mrb[12].mxu1 %vm137_vm3, %v758_v45 }
 0x471   :  { %2268 = vmatprep.mubr.msk.f32.mxu1 %vm2514_vm1, %v2513_v0 }
 0x48d   :  { %v928_v11 = vpop.trf.xlu1 }
 0x543   :  { %v823_v5 = vpop.f32.mrb[12].mxu1 }
 0x544   :  { %v2251_v6 = vpop.f32.mrb[13].mxu1  ;;  %2261 = vmatprep.mubr.msk.f32.mxu0 %vm137_vm3, %v823_v5 }
 0x545   :  { %v826_v7 = vpop.f32.mrb[14].mxu1 }
 0x546   :  { %v2835_v8 = vpack.c.bf16 %v826_v7, %v823_v5  ;;  %v2252_v10 = vpop.f32.mrb[15].mxu1  ;;  %2262 = vmatmul.mubr.msk.f32.vlgmr.msra.gmra.mrb[6].mxu0 %vm137_vm3, %v826_v7 }
 0x547   :  { %2273 = vmatprep.mubr.msk.bf16.mxu0 %vm2514_vm1, %v2513_v0 }
 0x548   :  { %1150 = vrot.lane.b32.xlu1 %v2835_v8, %s2521_s1  ;;  %2362 = vmatpush3.bf16.xpose.msk.msra.mxu1 %vm2666_vm4, %v2835_v8 }
 0x549   :  { %2272 = vmatpush3.bf16.msra.mxu0 %v2835_v8  ;;  %2277 = vmatprep.subr.bf16.mxu1 %v2513_v0 }
 0x54a   :  { %2283 = vmatprep.subr.bf16.mxu0 %v2513_v0 }
 0x54f   :  { %2269 = vmatmul.mubr.msk.f32.vlgmr.msra.gmra.mrb[2].mxu1 %vm137_vm3, %v928_v11 }
 0x550   :  { %2279 = vmatprep.mubr.msk.bf16.mxu1 %vm2514_vm1, %v2513_v0 }
 0x5ba   :  { %v1151_v13 = vpop.permute.xlu1 %1150 }
 0x5bb   :  { %2278 = vmatpush3.bf16.msra.mxu1 %v1151_v13 }
 0x5bc   :  { %2289 = vmatprep.subr.bf16.mxu1 %v2513_v0 }
 0x619   :  { %v2263_v14 = vpop.f32.mrb[6].mxu0 }
 0x61a   :  { %1024 = vperm.xlu0 %2390, %v2263_v14   ;;  %v903_v19 = vpop.f32.mrb[7].mxu0 }
 0x61e   :  { %2391 = vset.pattern.permute.xlu0 %v2518_v26 }
 0x61f   :  { %1113 = vperm.xlu0 %2391, %v2263_v14  }
 0x622   :  { %v1013_v16 = vpop.f32.mrb[2].mxu1 }
 0x623   :  { %2392 = vset.pattern.permute.xlu0 %v2517_v23  ;;  %v2270_v17 = vpop.f32.mrb[3].mxu1  ;;  %v1030_v18 = vrot.slane %v1013_v16, %v2696_v33  ;;  %v1119_v24 = vrot.slane %v1013_v16, %v2699_v36  ;;  %v1212_v34 = vrot.slane %v1013_v16, %v2717_v52  ;;  %v1304_v20 = vrot.slane %v1013_v16, %v2720_v58 }
 0x624   :  { %1206 = vperm.xlu0 %2392, %v2263_v14  }
 0x628   :  { %2393 = vset.pattern.permute.xlu0 %v2516_v15 }
 0x629   :  { %1019 = vperm.xlu0 %2393, %v903_v19  }
 0x62d   :  { %2394 = vset.pattern.permute.xlu0 %v2518_v26 }
 0x62e   :  { %1109 = vperm.xlu0 %2394, %v903_v19  }
 0x632   :  { %2395 = vset.pattern.permute.xlu0 %v2517_v23 }
 0x633   :  { %1202 = vperm.xlu0 %2395, %v903_v19  }
 0x637   :  { %2396 = vset.pattern.permute.xlu0 %v2519_v29 }
 0x638   :  { %1294 = vperm.xlu0 %2396, %v903_v19  }
 0x63c   :  { %1298 = vperm.xlu0 %2396, %v2263_v14  }
 0x699   :  { %v1025_v21 = vpop.permute.xlu0 %1024 }
 0x69a   :  { %v1032_v22 = vadd.f32 %v1030_v18, %v1025_v21 }
 0x69c   :  { %v1036_v25 = vmul.f32 0.2, %v1032_v22  ;;  %vm1034_vm4 = vcmp.gt.f32.partialorder %v1032_v22, 0.0 }
 0x69e   :  { %v1114_v27 = vpop.permute.xlu0 %1113  ;;  %v1038_v28 = vsel %vm1034_vm4, %v1032_v22, %v1036_v25 }
 0x69f   :  { %v1121_v30 = vadd.f32 %v1119_v24, %v1114_v27  ;;  %v2862_v31 = vsel %vm67_vm5, %v1038_v28, -1e+30 }
 0x6a0   :  { %v1044_v32 = vsel %vm348_vm7, %v2862_v31, -inf }
 0x6a1   :  { %v1125_v35 = vmul.f32 0.2, %v1121_v30  ;;  %1045 = vmax.xlane.f32.xlu1 %v1044_v32  ;;  %vm1123_vm9 = vcmp.gt.f32.partialorder %v1121_v30, 0.0 }
 0x6a3   :  { %v1207_v38 = vpop.permute.xlu0 %1206  ;;  %v1127_v39 = vsel %vm1123_vm9, %v1121_v30, %v1125_v35 }
 0x6a4   :  { %v1214_v41 = vadd.f32 %v1212_v34, %v1207_v38  ;;  %v1129_v42 = vsel %vm67_vm5, %v1127_v39, -1e+30 }
 0x6a5   :  { %v1133_v44 = vsel %vm348_vm7, %v1129_v42, -inf }
 0x6a6   :  { %v1218_v46 = vmul.f32 0.2, %v1214_v41  ;;  %1134 = vmax.xlane.f32.xlu0 %v1133_v44  ;;  %vm1216_vm10 = vcmp.gt.f32.partialorder %v1214_v41, 0.0 }
 0x6a8   :  { %v1020_v47 = vpop.permute.xlu0 %1019  ;;  %v1220_v48 = vsel %vm1216_vm10, %v1214_v41, %v1218_v46 }
 0x6a9   :  { %v1222_v49 = vsel %vm67_vm5, %v1220_v48, -1e+30  ;;  %v1031_v55 = vadd.f32 %v1030_v18, %v1020_v47 }
 0x6aa   :  { %v1226_v43 = vsel %vm348_vm7, %v1222_v49, -inf }
 0x6ab   :  { %1227 = vmax.xlane.f32.xlu0 %v1226_v43  ;;  %v1035_v59 = vmul.f32 0.2, %v1031_v55  ;;  %vm1033_vm12 = vcmp.gt.f32.partialorder %v1031_v55, 0.0 }
 0x6ad   :  { %v1110_v51 = vpop.permute.xlu0 %1109  ;;  %v1037_v45 = vsel %vm1033_vm12, %v1031_v55, %v1035_v59 }
 0x6ae   :  { %v1120_v50 = vadd.f32 %v1119_v24, %v1110_v51  ;;  %v1039_v7 = vsel %vm66_vm13, %v1037_v45, -1e+30 }
 0x6af   :  { %v1041_v13 = vsel %vm348_vm7, %v1039_v7, -inf }
 0x6b0   :  { %v1124_v2 = vmul.f32 0.2, %v1120_v50  ;;  %vm1122_vm15 = vcmp.gt.f32.partialorder %v1120_v50, 0.0 }
 0x6b2   :  { %v1203_v53 = vpop.permute.xlu0 %1202  ;;  %v1126_v11 = vsel %vm1122_vm15, %v1120_v50, %v1124_v2 }
 0x6b3   :  { %v1213_v3 = vadd.f32 %v1212_v34, %v1203_v53  ;;  %v1128_v14 = vsel %vm66_vm13, %v1126_v11, -1e+30 }
 0x6b4   :  { %v1130_v16 = vsel %vm348_vm7, %v1128_v14, -inf }
 0x6b5   :  { %v1217_v10 = vmul.f32 0.2, %v1213_v3  ;;  %vm1215_vm6 = vcmp.gt.f32.partialorder %v1213_v3, 0.0 }
 0x6b7   :  { %v1295_v54 = vpop.permute.xlu0 %1294  ;;  %v1219_v19 = vsel %vm1215_vm6, %v1213_v3, %v1217_v10 }
 0x6b8   :  { %v1305_v40 = vadd.f32 %v1304_v20, %v1295_v54  ;;  %v1221_v17 = vsel %vm66_vm13, %v1219_v19, -1e+30 }
 0x6b9   :  { %v1223_v18 = vsel %vm348_vm7, %v1221_v17, -inf }
 0x6ba   :  { %v1309_v56 = vmul.f32 0.2, %v1305_v40  ;;  %vm1307_vm11 = vcmp.gt.f32.partialorder %v1305_v40, 0.0 }
 0x6bb   :  { %v1299_v57 = vpop.permute.xlu0 %1298 }
 0x6bc   :  { %v1306_v60 = vadd.f32 %v1304_v20, %v1299_v57  ;;  %v1311_v61 = vsel %vm1307_vm11, %v1305_v40, %v1309_v56 }
 0x6bd   :  { %v1313_v62 = vsel %vm66_vm13, %v1311_v61, -1e+30 }
 0x6be   :  { %v1310_v63 = vmul.f32 0.2, %v1306_v60  ;;  %v1315_v1 = vsel %vm348_vm7, %v1313_v62, -inf  ;;  %vm1308_vm14 = vcmp.gt.f32.partialorder %v1306_v60, 0.0 }
 0x6bf   :  { %1316 = vmax.xlane.f32.xlu1 %v1315_v1 }
 0x6c0   :  { %v1312_v4 = vsel %vm1308_vm14, %v1306_v60, %v1310_v63 }
 0x6c1   :  { %v1314_v5 = vsel %vm67_vm5, %v1312_v4, -1e+30 }
 0x6c2   :  { %v1318_v6 = vsel %vm348_vm7, %v1314_v5, -inf }
 0x6c3   :  { %1319 = vmax.xlane.f32.xlu0 %v1318_v6 }
 0x6c7   :  { %1042 = vmax.xlane.f32.xlu0 %v1041_v13 }
 0x6cb   :  { %1131 = vmax.xlane.f32.xlu0 %v1130_v16 }
 0x6cf   :  { %1224 = vmax.xlane.f32.xlu0 %v1223_v18 }
 0x6d0   :  { %1334 = vrot.lane.b32.xlu1 %v2835_v8, %s2522_s4 }
 0x6e5   :  { %1242 = vrot.lane.b32.xlu0 %v2835_v8, %s2520_s3 }
 0x72e   :  { %v1046_v38 = vpop.xlane.xlu1 %1045 }
 0x72f   :  { %v1048_v39 = vsub.f32 %v2862_v31, %v1046_v38 }
 0x731   :  { %v1051_v41 = vmul.f32 1.442695, %v1048_v39 }
 0x733   :  { %v1135_v21 = vpop.xlane.xlu0 %1134 }
 0x734   :  { %v1137_v22 = vsub.f32 %v1129_v42, %v1135_v21 }
 0x736   :  { %v1140_v24 = vmul.f32 1.442695, %v1137_v22 }
 0x738   :  { %2445 = vpow2.f32 %v1140_v24  ;;  %v1228_v25 = vpop.xlane.xlu0 %1227 }
 0x739   :  { %v1230_v27 = vsub.f32 %v1222_v49, %v1228_v25 }
 0x73b   :  { %v1233_v28 = vmul.f32 1.442695, %v1230_v27 }
 0x73d   :  { %2447 = vpow2.f32 %v1233_v28 }
 0x73e   :  { %2449 = vpow2.f32 %v1051_v41 }
 0x742   :  { %v2446_v30 = vpop.eup %2445 }
 0x743   :  { %v1145_v32 = vsel %vm348_vm7, %v2446_v30, 0.0 }
 0x744   :  { %1146 = vadd.xlane.f32.xlu0 %v1145_v32 }
 0x747   :  { %v2448_v34 = vpop.eup %2447 }
 0x748   :  { %v1238_v35 = vsel %vm348_vm7, %v2448_v34, 0.0  ;;  %v2450_v56 = vpop.eup %2449 }
 0x749   :  { %1239 = vadd.xlane.f32.xlu1 %v1238_v35  ;;  %v1056_v6 = vsel %vm348_vm7, %v2450_v56, 0.0 }
 0x74c   :  { %v1317_v48 = vpop.xlane.xlu1 %1316 }
 0x74d   :  { %v1321_v51 = vsub.f32 %v1313_v62, %v1317_v48 }
 0x74f   :  { %v1323_v40 = vmul.f32 1.442695, %v1321_v51 }
 0x750   :  { %v1320_v8 = vpop.xlane.xlu0 %1319  ;;  %v1335_v1 = vpop.permute.xlu1 %1334 }
 0x751   :  { %v1322_v46 = vsub.f32 %v1314_v5, %v1320_v8 }
 0x753   :  { %v1325_v53 = vmul.f32 1.442695, %v1322_v46 }
 0x754   :  { %v1043_v42 = vpop.xlane.xlu0 %1042 }
 0x755   :  { %v1047_v44 = vsub.f32 %v1039_v7, %v1043_v42 }
 0x757   :  { %v1049_v47 = vmul.f32 1.442695, %v1047_v44 }
 0x758   :  { %v1132_v49 = vpop.xlane.xlu0 %1131 }
 0x759   :  { %2451 = vpow2.f32 %v1049_v47  ;;  %v1136_v43 = vsub.f32 %v1128_v14, %v1132_v49 }
 0x75b   :  { %v1138_v20 = vmul.f32 1.442695, %v1136_v43 }
 0x75c   :  { %v1225_v54 = vpop.xlane.xlu0 %1224 }
 0x75d   :  { %2453 = vpow2.f32 %v1138_v20  ;;  %v1229_v55 = vsub.f32 %v1221_v17, %v1225_v54 }
 0x75e   :  { %2455 = vpow2.f32 %v1325_v53 }
 0x75f   :  { %v1231_v31 = vmul.f32 1.442695, %v1229_v55 }
 0x760   :  { %v1243_v50 = vpop.permute.xlu0 %1242 }
 0x761   :  { %2457 = vpow2.f32 %v1231_v31 }
 0x762   :  { %2459 = vpow2.f32 %v1323_v40 }
 0x763   :  { %v2452_v57 = vpop.eup %2451 }
 0x764   :  { %v1059_v59 = vpack.c.bf16 %v2450_v56, %v2452_v57  ;;  %v1053_v11 = vsel %vm348_vm7, %v2452_v57, 0.0  ;;  %v2407_v56 = vld [vmem:[%s3056_s14] sm:$0xff]   ;;  %v2408_v57 = vld [vmem:[%s3056_s14 + $0x8] sm:$0xff]  }
 0x766   :  { %2274 = vmatmul.mubr.msk.bf16.vlgmr.msra.gmra.mrb[16].mxu0 %vm348_vm7, %v1059_v59  ;;  %v1455_v59 = vld [vmem:[%s3057_s16] sm:$0xff] }
 0x767   :  { %v2454_v60 = vpop.eup %2453  ;;  %2284 = vmatpush3.bf16.msra.mxu0 %v1243_v50  ;;  %2285 = vmatprep.mubr.msk.bf16.mxu0 %vm2514_vm1, %v2513_v0  ;;  %v1454_v50 = vld [vmem:[%s3058_s15] sm:$0xff] }
 0x768   :  { %v1142_v61 = vsel %vm348_vm7, %v2454_v60, 0.0  ;;  %v1148_v62 = vpack.c.bf16 %v2446_v30, %v2454_v60  ;;  %2295 = vmatprep.subr.bf16.mxu0 %v2513_v0  ;;  %v2456_v63 = vpop.eup %2455 }
 0x769   :  { %1143 = vadd.xlane.f32.xlu1 %v1142_v61  ;;  %v1330_v3 = vsel %vm348_vm7, %v2456_v63, 0.0 }
 0x76a   :  { %2280 = vmatmul.mubr.msk.bf16.vlgmr.msra.gmra.mrb[16].mxu1 %vm348_vm7, %v1148_v62 }
 0x76b   :  { %v2458_v2 = vpop.eup %2457  ;;  %2290 = vmatpush3.bf16.msra.mxu1 %v1335_v1  ;;  %2291 = vmatprep.mubr.msk.bf16.mxu1 %vm2514_vm1, %v2513_v0 }
 0x76c   :  { %v1235_v4 = vsel %vm348_vm7, %v2458_v2, 0.0  ;;  %v1241_v45 = vpack.c.bf16 %v2448_v34, %v2458_v2  ;;  %v2460_v5 = vpop.eup %2459  ;;  %2303 = vmatprep.subr.mxu1 %v1455_v59 }
 0x76d   :  { %1331 = vadd.xlane.f32.xlu1 %v1330_v3  ;;  %1236 = vadd.xlane.f32.xlu0 %v1235_v4  ;;  %v1327_v7 = vsel %vm348_vm7, %v2460_v5, 0.0  ;;  %v1333_v10 = vpack.c.bf16 %v2456_v63, %v2460_v5 }
 0x76e   :  { %2286 = vmatmul.mubr.msk.bf16.vlgmr.msra.gmra.mrb[20].mxu0 %vm348_vm7, %v1241_v45  ;;  %v2119_v45 = vld [vmem:[%s3059_s11] ss:$0 sm:$0xff] }
 0x76f   :  { %2299 = vmatprep.mubr.msk.bf16.mxu0 %vm2514_vm1, %v2513_v0  ;;  %2296 = vmatpush3.bf16.msra.mxu0 %v2407_v56 }
 0x770   :  { %2297 = vmatprep.subr.bf16.mxu0 %v2513_v0 }
 0x771   :  { %1057 = vadd.xlane.f32.xlu1 %v1056_v6  ;;  %1328 = vadd.xlane.f32.xlu0 %v1327_v7 }
 0x772   :  { %2292 = vmatmul.mubr.msk.bf16.vlgmr.msra.gmra.mrb[20].mxu1 %vm348_vm7, %v1333_v10 }
 0x773   :  { %2298 = vmatpush3.bf16.msra.mxu0 %v2408_v57  ;;  %2304 = vmatpush3.msra.mxu1 %v1455_v59 }
 0x774   :  { %2363 = vmatprep.subr.bf16.mxu0 %v2515_v12  ;;  %2315 = vmatprep.subr.bf16.mxu1 %v2513_v0 }
 0x775   :  { %1054 = vadd.xlane.f32.xlu0 %v1053_v11 }
 0x7d1   :  { %v1147_v14 = vpop.xlane.xlu0 %1146 }
 0x7d6   :  { %v1240_v13 = vpop.xlane.xlu1 %1239 }
 0x7f6   :  { %v1144_v19 = vpop.xlane.xlu1 %1143 }
 0x7f7   :  { %2461 = vrcp.f32 %v1144_v19 }
 0x7f8   :  { %2463 = vrcp.f32 %v1147_v14 }
 0x7fa   :  { %v1237_v16 = vpop.xlane.xlu0 %1236  ;;  %v1332_v28 = vpop.xlane.xlu1 %1331 }
 0x7fb   :  { %2465 = vrcp.f32 %v1237_v16 }
 0x7fe   :  { %v1329_v17 = vpop.xlane.xlu0 %1328  ;;  %v1058_v61 = vpop.xlane.xlu1 %1057 }
 0x7ff   :  { %2467 = vrcp.f32 %v1329_v17 }
 0x800   :  { %2469 = vrcp.f32 %v1240_v13 }
 0x801   :  { %v2462_v25 = vpop.eup %2461  ;;  %2471 = vrcp.f32 %v1332_v28  ;;  %v2122_v28 = vld [vmem:[%s3060_s12] ss:$0 sm:$0xff]  ;;  %s2526_s12 = smov 124  }
 0x802   :  { %v2464_v34 = vpop.eup %2463  ;;  %v1055_v60 = vpop.xlane.xlu0 %1054 }
 0x803   :  { %2473 = vrcp.f32 %v1055_v60 }
 0x804   :  { %2475 = vrcp.f32 %v1058_v61 }
 0x805   :  { %v2466_v42 = vpop.eup %2465 }
 0x809   :  { %v2468_v48 = vpop.eup %2467 }
 0x80a   :  { %v2470_v53 = vpop.eup %2469 }
 0x80b   :  { %v2472_v40 = vpop.eup %2471 }
 0x80d   :  { %v2474_v63 = vpop.eup %2473 }
 0x80e   :  { %v2476_v7 = vpop.eup %2475 }
 0x839   :  { %v1097_v18 = vpop.f32.mrb[16].mxu0 }
 0x83a   :  { %v2275_v21 = vpop.f32.mrb[17].mxu0  ;;  %v1106_v1 = vmul.f32 %v2474_v63, %v1097_v18 }
 0x83b   :  { %v2913_v22 = vpop.f32.mrb[18].mxu0 }
 0x83c   :  { %v2276_v24 = vpop.f32.mrb[19].mxu0  ;;  %v1107_v13 = vmul.f32 %v2476_v7, %v2913_v22 }
 0x83d   :  { %v1190_v27 = vpop.f32.mrb[16].mxu1 }
 0x83e   :  { %v1199_v30 = vmul.f32 %v2462_v25, %v1190_v27  ;;  %v2281_v32 = vpop.f32.mrb[17].mxu1 }
 0x83f   :  { %v1193_v35 = vpop.f32.mrb[18].mxu1 }
 0x840   :  { %v1200_v38 = vmul.f32 %v2464_v34, %v1193_v35  ;;  %v2282_v39 = vpop.f32.mrb[19].mxu1  ;;  %1387 = vrot.lane.b32.xlu0 %v1199_v30, %s2523_s23  ;;  %v2123_v35 = vld [vmem:[%s3061_s13] ss:$0 sm:$0xff]  ;;  %s2527_s13 = smov 126  }
 0x841   :  { %v1282_v8 = vpop.f32.mrb[20].mxu0 }
 0x842   :  { %v2287_v41 = vpop.f32.mrb[21].mxu0  ;;  %1389 = vrot.lane.b32.xlu1 %v1200_v38, %s2523_s23  ;;  %v1291_v46 = vmul.f32 %v2466_v42, %v1282_v8 }
 0x843   :  { %v1285_v44 = vpop.f32.mrb[22].mxu0 }
 0x844   :  { %v2288_v47 = vpop.f32.mrb[23].mxu0  ;;  %v1292_v54 = vmul.f32 %v2470_v53, %v1285_v44 }
 0x845   :  { %v1374_v49 = vpop.f32.mrb[20].mxu1 }
 0x846   :  { %v1383_v43 = vmul.f32 %v2468_v48, %v1374_v49  ;;  %v2293_v51 = vpop.f32.mrb[21].mxu1  ;;  %1395 = vrot.lane.b32.xlu1 %v1291_v46, %s2524_s24 }
 0x847   :  { %v1377_v20 = vpop.f32.mrb[22].mxu1 }
 0x848   :  { %v2294_v55 = vpop.f32.mrb[23].mxu1  ;;  %1403 = vrot.lane.b32.xlu0 %v1383_v43, %s2525_s25  ;;  %v1384_v31 = vmul.f32 %v2472_v40, %v1377_v20 }
 0x84a   :  { %1397 = vrot.lane.b32.xlu1 %v1292_v54, %s2524_s24 }
 0x84e   :  { %1405 = vrot.lane.b32.xlu1 %v1384_v31, %s2525_s25 }
 0x866   :  { %1595 = vxpose.xlu0.b32.start.end [1/1] (short) (narrow) %v1454_v50, 8 }
 0x8b2   :  { %v1388_v12 = vpop.permute.xlu0 %1387 }
 0x8b3   :  { %v1409_v2 = vsel %vm87_vm2, %v1106_v1, %v1388_v12 }
 0x8b4   :  { %v1390_v62 = vpop.permute.xlu1 %1389 }
 0x8b5   :  { %v1410_v19 = vsel %vm87_vm2, %v1107_v13, %v1390_v62 }
 0x8b8   :  { %v1396_v3 = vpop.permute.xlu1 %1395 }
 0x8b9   :  { %v1411_v4 = vsel %vm348_vm7, %v1409_v2, %v1396_v3 }
 0x8ba   :  { %v1404_v5 = vpop.permute.xlu0 %1403 }
 0x8bb   :  { %v1413_v6 = vsel %vm721_vm0, %v1411_v4, %v1404_v5 }
 0x8bc   :  { %v1421_v10 = vadd.f32 %v2119_v45, %v1413_v6  ;;  %v1398_v11 = vpop.permute.xlu1 %1397 }
 0x8bd   :  { %v1412_v16 = vsel %vm348_vm7, %v1410_v19, %v1398_v11 }
 0x8be   :  { %v1425_v14 = vmul.f32 1.442695, %v1421_v10  ;;  %vm1423_vm8 = vcmp.gt.f32.partialorder %v1421_v10, 0.0 }
 0x8c0   :  { %2477 = vpow2.f32 %v1425_v14  ;;  %v1406_v17 = vpop.permute.xlu1 %1405 }
 0x8c1   :  { %v1414_v18 = vsel %vm721_vm0, %v1412_v16, %v1406_v17  ;;  %vm2365_vm0 = vmpackc.low %vm87_vm2, %vm87_vm2 }
 0x8c2   :  { %v1422_v21 = vadd.f32 %v2119_v45, %v1414_v18 }
 0x8c4   :  { %v1427_v24 = vmul.f32 1.442695, %v1422_v21  ;;  %vm1424_vm4 = vcmp.gt.f32.partialorder %v1422_v21, 0.0 }
 0x8c6   :  { %2479 = vpow2.f32 %v1427_v24 }
 0x8ca   :  { %v2478_v25 = vpop.eup %2477 }
 0x8cb   :  { %v2120_v27 = vadd.f32 -1.0, %v2478_v25 }
 0x8cd   :  { %v1431_v22 = vsel %vm1423_vm8, %v1421_v10, %v2120_v27 }
 0x8ce   :  { %v1439_v34 = vmul.f32 %v2122_v28, %v1431_v22 }
 0x8d0   :  { %v2480_v30 = vpop.eup %2479  ;;  %v1447_v8 = vadd.f32 %v2123_v35, %v1439_v34 }
 0x8d1   :  { %v2121_v32 = vadd.f32 -1.0, %v2480_v30 }
 0x8d3   :  { %v1432_v38 = vsel %vm1424_vm4, %v1422_v21, %v2121_v32 }
 0x8d4   :  { %v1440_v39 = vmul.f32 %v2122_v28, %v1432_v38 }
 0x8d6   :  { %v1448_v41 = vadd.f32 %v2123_v35, %v1440_v39 }
 0x8d8   :  { %v1449_v42 = vpack.c.bf16 %v1448_v41, %v1447_v8 }
 0x8da   :  { %2300 = vmatmul.mubr.msk.bf16.vlgmr.msra.gmra.mrb[24].mxu0 %vm137_vm3, %v1449_v42 }
 0x8db   :  { %2312 = vmatprep.mubr.msk.f32.mxu0 %vm2514_vm1, %v2513_v0 }
 0x8e6   :  { %v1611_v43 = vpop.trf.xlu0 }
 0x9ad   :  { %v1506_v44 = vpop.f32.mrb[24].mxu0 }
 0x9ae   :  { %v2301_v46 = vpop.f32.mrb[25].mxu0  ;;  %2305 = vmatprep.mubr.msk.f32.mxu1 %vm87_vm2, %v1506_v44 }
 0x9af   :  { %v1509_v47 = vpop.f32.mrb[26].mxu0 }
 0x9b0   :  { %v2958_v48 = vpack.c.bf16 %v1509_v47, %v1506_v44  ;;  %v2302_v49 = vpop.f32.mrb[27].mxu0  ;;  %2306 = vmatmul.mubr.msk.f32.vlgmr.msra.gmra.mrb[24].mxu1 %vm87_vm2, %v1509_v47 }
 0x9b1   :  { %2317 = vmatprep.mubr.msk.bf16.mxu1 %vm2514_vm1, %v2513_v0 }
 0x9b2   :  { %2366 = vmatpush3.bf16.xpose.msk.msra.mxu0 %vm2365_vm0, %v2958_v48  ;;  %2316 = vmatpush3.bf16.msra.mxu1 %v2958_v48 }
 0x9b3   :  { %2321 = vmatprep.subr.bf16.mxu0 %v2513_v0  ;;  %2327 = vmatprep.subr.bf16.mxu1 %v2513_v0 }
 0x9b9   :  { %2313 = vmatmul.mubr.msk.f32.vlgmr.msra.gmra.mrb[28].mxu0 %vm87_vm2, %v1611_v43 }
 0x9ba   :  { %2323 = vmatprep.mubr.msk.bf16.mxu0 %vm2514_vm1, %v2513_v0 }
 0xa83   :  { %v2307_v51 = vpop.f32.mrb[24].mxu1 }
 0xa84   :  { %1981 = vperm.xlu0 %2396, %v2307_v51   ;;  %1707 = vperm.xlu1 %2397, %v2307_v51   ;;  %v1586_v53 = vpop.f32.mrb[25].mxu1 }
 0xa88   :  { %2398 = vset.pattern.permute.xlu1 %v2518_v26 }
 0xa89   :  { %1796 = vperm.xlu1 %2398, %v2307_v51  }
 0xa8c   :  { %v1696_v20 = vpop.f32.mrb[28].mxu0 }
 0xa8d   :  { %2399 = vset.pattern.permute.xlu1 %v2517_v23  ;;  %v2314_v54 = vpop.f32.mrb[29].mxu0  ;;  %v1713_v55 = vrot.slane %v1696_v20, %v2696_v33  ;;  %v1895_v33 = vrot.slane %v1696_v20, %v2717_v52  ;;  %v1987_v61 = vrot.slane %v1696_v20, %v2720_v58 }
 0xa8e   :  { %1889 = vperm.xlu1 %2399, %v2307_v51  }
 0xa92   :  { %2400 = vset.pattern.permute.xlu1 %v2516_v15 }
 0xa93   :  { %1702 = vperm.xlu1 %2400, %v1586_v53  }
 0xa97   :  { %2401 = vset.pattern.permute.xlu1 %v2518_v26 }
 0xa98   :  { %1792 = vperm.xlu1 %2401, %v1586_v53  }
 0xa9c   :  { %2402 = vset.pattern.permute.xlu1 %v2517_v23  ;;  %v1802_v23 = vrot.slane %v1696_v20, %v2699_v36 }
 0xa9d   :  { %1885 = vperm.xlu1 %2402, %v1586_v53  }
 0xaa1   :  { %2403 = vset.pattern.permute.xlu1 %v2519_v29 }
 0xaa2   :  { %1977 = vperm.xlu1 %2403, %v1586_v53  }
 0xb03   :  { %v1708_v40 = vpop.permute.xlu1 %1707  ;;  %v1982_v1 = vpop.permute.xlu0 %1981 }
 0xb04   :  { %v1715_v31 = vadd.f32 %v1713_v55, %v1708_v40  ;;  %v1989_v3 = vadd.f32 %v1987_v61, %v1982_v1 }
 0xb06   :  { %v1719_v56 = vmul.f32 0.2, %v1715_v31  ;;  %vm1717_vm2 = vcmp.gt.f32.partialorder %v1715_v31, 0.0  ;;  %v1993_v11 = vmul.f32 0.2, %v1989_v3  ;;  %vm1991_vm12 = vcmp.gt.f32.partialorder %v1989_v3, 0.0 }
 0xb08   :  { %v1797_v57 = vpop.permute.xlu1 %1796  ;;  %v1721_v59 = vsel %vm1717_vm2, %v1715_v31, %v1719_v56  ;;  %v1995_v21 = vsel %vm1991_vm12, %v1989_v3, %v1993_v11 }
 0xb09   :  { %v2979_v15 = vsel %vm67_vm5, %v1721_v59, -1e+30  ;;  %v1804_v50 = vadd.f32 %v1802_v23, %v1797_v57  ;;  %v1997_v25 = vsel %vm67_vm5, %v1995_v21, -1e+30 }
 0xb0a   :  { %v1727_v26 = vsel %vm348_vm7, %v2979_v15, -inf  ;;  %v2001_v27 = vsel %vm348_vm7, %v1997_v25, -inf }
 0xb0b   :  { %1728 = vmax.xlane.f32.xlu1 %v1727_v26  ;;  %v1808_v62 = vmul.f32 0.2, %v1804_v50  ;;  %vm1806_vm3 = vcmp.gt.f32.partialorder %v1804_v50, 0.0 }
 0xb0d   :  { %v1890_v29 = vpop.permute.xlu1 %1889  ;;  %v1810_v36 = vsel %vm1806_vm3, %v1804_v50, %v1808_v62 }
 0xb0e   :  { %v1897_v63 = vadd.f32 %v1895_v33, %v1890_v29  ;;  %v1812_v10 = vsel %vm67_vm5, %v1810_v36, -1e+30 }
 0xb0f   :  { %v1816_v19 = vsel %vm348_vm7, %v1812_v10, -inf }
 0xb10   :  { %v1901_v4 = vmul.f32 0.2, %v1897_v63  ;;  %vm1899_vm10 = vcmp.gt.f32.partialorder %v1897_v63, 0.0 }
 0xb12   :  { %v1703_v60 = vpop.permute.xlu1 %1702  ;;  %v1903_v13 = vsel %vm1899_vm10, %v1897_v63, %v1901_v4 }
 0xb13   :  { %v1714_v12 = vadd.f32 %v1713_v55, %v1703_v60  ;;  %v1905_v18 = vsel %vm67_vm5, %v1903_v13, -1e+30 }
 0xb14   :  { %v1909_v24 = vsel %vm348_vm7, %v1905_v18, -inf }
 0xb15   :  { %v1718_v2 = vmul.f32 0.2, %v1714_v12  ;;  %vm1716_vm9 = vcmp.gt.f32.partialorder %v1714_v12, 0.0 }
 0xb17   :  { %v1793_v45 = vpop.permute.xlu1 %1792  ;;  %v1720_v5 = vsel %vm1716_vm9, %v1714_v12, %v1718_v2 }
 0xb18   :  { %v1803_v6 = vadd.f32 %v1802_v23, %v1793_v45  ;;  %v1722_v7 = vsel %vm66_vm13, %v1720_v5, -1e+30 }
 0xb19   :  { %v1724_v52 = vsel %vm348_vm7, %v1722_v7, -inf }
 0xb1a   :  { %v1807_v58 = vmul.f32 0.2, %v1803_v6  ;;  %1725 = vmax.xlane.f32.xlu1 %v1724_v52  ;;  %vm1805_vm11 = vcmp.gt.f32.partialorder %v1803_v6, 0.0 }
 0xb1c   :  { %v1809_v14 = vsel %vm1805_vm11, %v1803_v6, %v1807_v58  ;;  %v1886_v28 = vpop.permute.xlu1 %1885 }
 0xb1d   :  { %v1811_v16 = vsel %vm66_vm13, %v1809_v14, -1e+30  ;;  %v1896_v22 = vadd.f32 %v1895_v33, %v1886_v28 }
 0xb1e   :  { %1817 = vmax.xlane.f32.xlu1 %v1816_v19  ;;  %v1813_v17 = vsel %vm348_vm7, %v1811_v16, -inf }
 0xb1f   :  { %1814 = vmax.xlane.f32.xlu0 %v1813_v17  ;;  %v1900_v32 = vmul.f32 0.2, %v1896_v22  ;;  %vm1898_vm14 = vcmp.gt.f32.partialorder %v1896_v22, 0.0 }
 0xb21   :  { %v1978_v30 = vpop.permute.xlu1 %1977  ;;  %v1902_v38 = vsel %vm1898_vm14, %v1896_v22, %v1900_v32 }
 0xb22   :  { %1910 = vmax.xlane.f32.xlu1 %v1909_v24  ;;  %v1988_v34 = vadd.f32 %v1987_v61, %v1978_v30  ;;  %v3005_v37 = vsel %vm66_vm13, %v1902_v38, -1e+30 }
 0xb23   :  { %v1906_v8 = vsel %vm348_vm7, %v3005_v37, -inf }
 0xb24   :  { %v1992_v35 = vmul.f32 0.2, %v1988_v34  ;;  %vm1990_vm15 = vcmp.gt.f32.partialorder %v1988_v34, 0.0 }
 0xb26   :  { %2002 = vmax.xlane.f32.xlu1 %v2001_v27  ;;  %v1994_v39 = vsel %vm1990_vm15, %v1988_v34, %v1992_v35 }
 0xb27   :  { %v3011_v41 = vsel %vm66_vm13, %v1994_v39, -1e+30 }
 0xb28   :  { %v1998_v42 = vsel %vm348_vm7, %v3011_v41, -inf }
 0xb35   :  { %1925 = vrot.lane.b32.xlu0 %v2958_v48, %s2526_s12 }
 0xb37   :  { %1833 = vrot.lane.b32.xlu1 %v2958_v48, %s2527_s13 }
 0xb5b   :  { %1907 = vmax.xlane.f32.xlu1 %v1906_v8 }
 0xb5f   :  { %1999 = vmax.xlane.f32.xlu1 %v1998_v42 }
 0xb70   :  { %2017 = vrot.lane.b32.xlu1 %v2958_v48, %s2528_s27 }
 0xb98   :  { %v1729_v44 = vpop.xlane.xlu1 %1728 }
 0xb99   :  { %v1731_v46 = vsub.f32 %v2979_v15, %v1729_v44 }
 0xb9b   :  { %v1734_v47 = vmul.f32 1.442695, %v1731_v46 }
 0xb9d   :  { %2481 = vpow2.f32 %v1734_v47 }
 0xba7   :  { %v2482_v49 = vpop.eup %2481  ;;  %v1726_v43 = vpop.xlane.xlu1 %1725 }
 0xba8   :  { %v1730_v51 = vsub.f32 %v1722_v7, %v1726_v43  ;;  %v1739_v53 = vsel %vm348_vm7, %v2482_v49, 0.0 }
 0xba9   :  { %1740 = vadd.xlane.f32.xlu0 %v1739_v53 }
 0xbaa   :  { %v1732_v9 = vmul.f32 1.442695, %v1730_v51 }
 0xbab   :  { %v1818_v20 = vpop.xlane.xlu1 %1817 }
 0xbac   :  { %2483 = vpow2.f32 %v1732_v9  ;;  %v1820_v54 = vsub.f32 %v1812_v10, %v1818_v20  ;;  %v1815_v55 = vpop.xlane.xlu0 %1814 }
 0xbad   :  { %v1819_v40 = vsub.f32 %v1811_v16, %v1815_v55 }
 0xbae   :  { %v1823_v31 = vmul.f32 1.442695, %v1820_v54 }
 0xbaf   :  { %v1821_v56 = vmul.f32 1.442695, %v1819_v40  ;;  %v1911_v48 = vpop.xlane.xlu1 %1910 }
 0xbb0   :  { %2485 = vpow2.f32 %v1823_v31  ;;  %v1913_v57 = vsub.f32 %v1905_v18, %v1911_v48  ;;  %v1926_v33 = vpop.permute.xlu0 %1925 }
 0xbb1   :  { %2487 = vpow2.f32 %v1821_v56 }
 0xbb2   :  { %v1916_v59 = vmul.f32 1.442695, %v1913_v57 }
 0xbb3   :  { %v2003_v15 = vpop.xlane.xlu1 %2002 }
 0xbb4   :  { %2489 = vpow2.f32 %v1916_v59  ;;  %v2005_v23 = vsub.f32 %v1997_v25, %v2003_v15 }
 0xbb6   :  { %v2484_v26 = vpop.eup %2483  ;;  %v2008_v61 = vmul.f32 1.442695, %v2005_v23 }
 0xbb7   :  { %v1834_v29 = vpop.permute.xlu1 %1833  ;;  %v1742_v50 = vpack.c.bf16 %v2482_v49, %v2484_v26  ;;  %v1736_v3 = vsel %vm348_vm7, %v2484_v26, 0.0 }
 0xbb8   :  { %2322 = vmatpush3.bf16.msra.mxu0 %v1834_v29  ;;  %2491 = vpow2.f32 %v2008_v61 }
 0xbb9   :  { %2318 = vmatmul.mubr.msk.bf16.vlgmr.msra.gmra.mrb[28].mxu1 %vm348_vm7, %v1742_v50  ;;  %2333 = vmatprep.subr.bf16.mxu0 %v2513_v0 }
 0xbba   :  { %v2486_v60 = vpop.eup %2485  ;;  %2328 = vmatpush3.bf16.msra.mxu1 %v1926_v33  ;;  %2329 = vmatprep.mubr.msk.bf16.mxu1 %vm2514_vm1, %v2513_v0 }
 0xbbb   :  { %v2488_v62 = vpop.eup %2487  ;;  %v1828_v63 = vsel %vm348_vm7, %v2486_v60, 0.0 }
 0xbbc   :  { %1829 = vadd.xlane.f32.xlu1 %v1828_v63  ;;  %v1831_v12 = vpack.c.bf16 %v2486_v60, %v2488_v62  ;;  %v1825_v4 = vsel %vm348_vm7, %v2488_v62, 0.0 }
 0xbbe   :  { %v2490_v1 = vpop.eup %2489  ;;  %2324 = vmatmul.mubr.msk.bf16.vlgmr.msra.gmra.mrb[32].mxu0 %vm348_vm7, %v1831_v12 }
 0xbbf   :  { %v1921_v2 = vsel %vm348_vm7, %v2490_v1, 0.0  ;;  %2335 = vmatprep.mubr.msk.bf16.mxu0 %vm2514_vm1, %v2513_v0  ;;  %vm2084_vm1 = vcmask 15360  }
 0xbc0   :  { %1922 = vadd.xlane.f32.xlu1 %v1921_v2 }
 0xbc2   :  { %v2492_v45 = vpop.eup %2491 }
 0xbc3   :  { %v2013_v5 = vsel %vm348_vm7, %v2492_v45, 0.0 }
 0xbc4   :  { %1737 = vadd.xlane.f32.xlu1 %v1736_v3 }
 0xbc8   :  { %1826 = vadd.xlane.f32.xlu1 %v1825_v4 }
 0xbcc   :  { %2014 = vadd.xlane.f32.xlu1 %v2013_v5 }
 0xbe8   :  { %v1908_v36 = vpop.xlane.xlu1 %1907 }
 0xbe9   :  { %v1912_v6 = vsub.f32 %v3005_v37, %v1908_v36 }
 0xbeb   :  { %v1914_v7 = vmul.f32 1.442695, %v1912_v6 }
 0xbec   :  { %v2000_v52 = vpop.xlane.xlu1 %1999 }
 0xbed   :  { %2493 = vpow2.f32 %v1914_v7  ;;  %v2004_v58 = vsub.f32 %v3011_v41, %v2000_v52 }
 0xbef   :  { %v2006_v0 = vmul.f32 1.442695, %v2004_v58 }
 0xbf0   :  { %v2018_v10 = vpop.permute.xlu1 %2017 }
 0xbf1   :  { %2495 = vpow2.f32 %v2006_v0  ;;  %2334 = vmatpush3.bf16.msra.mxu0 %v2018_v10 }
 0xbf7   :  { %v2494_v11 = vpop.eup %2493 }
 0xbf8   :  { %v1918_v13 = vsel %vm348_vm7, %v2494_v11, 0.0  ;;  %v1924_v14 = vpack.c.bf16 %v2490_v1, %v2494_v11  ;;  %v2136_v1 = vld [vmem:[%s3062_s17] ss:$0 sm:$0xff] }
 0xbf9   :  { %1919 = vadd.xlane.f32.xlu0 %v1918_v13 }
 0xbfa   :  { %2330 = vmatmul.mubr.msk.bf16.vlgmr.msra.gmra.mrb[32].mxu1 %vm348_vm7, %v1924_v14 }
 0xbfb   :  { %v2496_v19 = vpop.eup %2495 }
 0xbfc   :  { %v2010_v16 = vsel %vm348_vm7, %v2496_v19, 0.0  ;;  %v2016_v17 = vpack.c.bf16 %v2492_v45, %v2496_v19 }
 0xbfd   :  { %2011 = vadd.xlane.f32.xlu0 %v2010_v16 }
 0xbfe   :  { %2336 = vmatmul.mubr.msk.bf16.vlgmr.msra.gmra.mrb[36].mxu0 %vm348_vm7, %v2016_v17 }
 0xc36   :  { %v1741_v27 = vpop.xlane.xlu0 %1740 }
 0xc49   :  { %v1830_v18 = vpop.xlane.xlu1 %1829 }
 0xc4d   :  { %v1923_v21 = vpop.xlane.xlu1 %1922 }
 0xc51   :  { %v1738_v24 = vpop.xlane.xlu1 %1737 }
 0xc52   :  { %2497 = vrcp.f32 %v1738_v24 }
 0xc55   :  { %v1827_v25 = vpop.xlane.xlu1 %1826 }
 0xc56   :  { %2499 = vrcp.f32 %v1827_v25 }
 0xc57   :  { %2501 = vrcp.f32 %v1741_v27 }
 0xc58   :  { %2503 = vrcp.f32 %v1830_v18 }
 0xc59   :  { %v2015_v20 = vpop.xlane.xlu1 %2014 }
 0xc5c   :  { %v2498_v34 = vpop.eup %2497 }
 0xc60   :  { %v2500_v35 = vpop.eup %2499 }
 0xc61   :  { %v2502_v37 = vpop.eup %2501 }
 0xc62   :  { %v2504_v42 = vpop.eup %2503 }
 0xc86   :  { %v1920_v53 = vpop.xlane.xlu0 %1919 }
 0xc87   :  { %2505 = vrcp.f32 %v1920_v53 }
 0xc88   :  { %2507 = vrcp.f32 %v1923_v21 }
 0xc8a   :  { %v2012_v9 = vpop.xlane.xlu0 %2011 }
 0xc8b   :  { %2509 = vrcp.f32 %v2012_v9 }
 0xc8c   :  { %v1780_v28 = vpop.f32.mrb[28].mxu1  ;;  %2511 = vrcp.f32 %v2015_v20 }
 0xc8d   :  { %v2319_v22 = vpop.f32.mrb[29].mxu1  ;;  %v1789_v39 = vmul.f32 %v2498_v34, %v1780_v28 }
 0xc8e   :  { %v1783_v30 = vpop.f32.mrb[30].mxu1 }
 0xc8f   :  { %v2320_v32 = vpop.f32.mrb[31].mxu1  ;;  %v1790_v46 = vmul.f32 %v2502_v37, %v1783_v30 }
 0xc91   :  { %v1873_v38 = vpop.f32.mrb[32].mxu0  ;;  %v2506_v54 = vpop.eup %2505 }
 0xc92   :  { %v1882_v8 = vmul.f32 %v2500_v35, %v1873_v38  ;;  %v2325_v41 = vpop.f32.mrb[33].mxu0  ;;  %v2508_v56 = vpop.eup %2507 }
 0xc93   :  { %v1876_v44 = vpop.f32.mrb[34].mxu0 }
 0xc94   :  { %v2068_v47 = vadd.f32 %v1882_v8, %v1789_v39  ;;  %v1883_v49 = vmul.f32 %v2504_v42, %v1876_v44  ;;  %v2326_v43 = vpop.f32.mrb[35].mxu0 }
 0xc95   :  { %v2510_v26 = vpop.eup %2509 }
 0xc96   :  { %v2069_v51 = vadd.f32 %v1883_v49, %v1790_v46  ;;  %v2512_v60 = vpop.eup %2511 }
 0xccd   :  { %v1965_v55 = vpop.f32.mrb[32].mxu1 }
 0xcce   :  { %v1974_v40 = vmul.f32 %v2506_v54, %v1965_v55  ;;  %v2331_v31 = vpop.f32.mrb[33].mxu1 }
 0xccf   :  { %v1968_v48 = vpop.f32.mrb[34].mxu1 }
 0xcd0   :  { %v2070_v57 = vadd.f32 %v2068_v47, %v1974_v40  ;;  %v1975_v59 = vmul.f32 %v2508_v56, %v1968_v48  ;;  %v2332_v15 = vpop.f32.mrb[35].mxu1 }
 0xcd1   :  { %v2057_v23 = vpop.f32.mrb[36].mxu0 }
 0xcd2   :  { %v2071_v29 = vadd.f32 %v2069_v51, %v1975_v59  ;;  %v2066_v50 = vmul.f32 %v2510_v26, %v2057_v23  ;;  %v2337_v33 = vpop.f32.mrb[37].mxu0 }
 0xcd3   :  { %v2060_v61 = vpop.f32.mrb[38].mxu0 }
 0xcd4   :  { %v2072_v62 = vadd.f32 %v2070_v57, %v2066_v50  ;;  %v2067_v63 = vmul.f32 %v2512_v60, %v2060_v61  ;;  %v2338_v12 = vpop.f32.mrb[39].mxu0 }
 0xcd6   :  { %v2074_v2 = vmul.f32 0.25, %v2072_v62  ;;  %v2073_v3 = vadd.f32 %v2071_v29, %v2067_v63 }
 0xcd8   :  { %v2082_v4 = vadd.f32 %v2136_v1, %v2074_v2  ;;  %v2075_v45 = vmul.f32 0.25, %v2073_v3 }
 0xcda   :  { %2085 = vst.msk [vmem:[%s3063_s18] sm:$0xff] %vm2084_vm1, %v2082_v4  ;;  %v2083_v5 = vadd.f32 %v2136_v1, %v2075_v45 }
 0xcdc   :  { %2086 = vst.msk [vmem:[%s3063_s18 + $0x8] sm:$0xff] %vm2084_vm1, %v2083_v5 }

</bundles_post_ra>
